<compile_context>
chip_gen: v7x
topology: tpu7x:2x2x1
jax: 0.10.0
libtpu: 0.0.40
codegen_flags: <defaults>
</compile_context>

<pallas_src>
import functools

import jax
import jax.numpy as jnp
from jax import lax
from jax.experimental import pallas as pl
from jax.experimental.pallas import tpu as pltpu


def _round_up(v, m):
    return -(-v // m) * m


# ----------------------------------------------------------------------------
# Fused kernel: depthwise-H conv + ReLU, depthwise-V conv + ReLU, 1x1 fusion
# ----------------------------------------------------------------------------
def _make_fused_kernel(C, H, W, K_h, K_v, pad_w, pad_h, dil, padf, hw_stride,
                       seg, B_tile):
    HW = H * W

    def kernel(x_ref, wh_ref, wv_ref, wf_ref, b_ref, widx_ref, o_ref,
               buf_ref, stack_ref):
        # x_ref     : (B_tile, C, HW)        flattened-spatial activations
        # wh_ref    : (C, K_h)               horizontal depthwise taps
        # wv_ref    : (C, K_v)               vertical depthwise taps
        # wf_ref    : (C, 3C)                1x1 fusion weight, [h | v | x]
        # b_ref     : (C, 1)                 fusion bias (f32)
        # widx_ref  : (1, HW) int32          column index of each flat position
        # o_ref     : (B_tile, C, HW)
        # buf_ref   : (C, padf + B_tile*seg) zero-padded VMEM staging buffer
        # stack_ref : (3C, B_tile*hw_stride) f32 staging for the fusion dot

        # ---- one-time init of the zero pad slabs ----------------------------
        # Scratch persists across grid steps and nothing below ever writes the
        # pads, so zero them only on the first step.
        @pl.when(pl.program_id(0) == 0)
        def _init_pads():
            buf_ref[:, 0:padf] = jnp.zeros((C, padf), buf_ref.dtype)
            for b in range(B_tile):
                g0 = padf + b * seg + HW
                g1 = padf + (b + 1) * seg
                buf_ref[:, g0:g1] = jnp.zeros((C, g1 - g0), buf_ref.dtype)
            if hw_stride != HW:                     # unused MXU pad columns
                for b in range(B_tile):
                    c0 = b * hw_stride + HW
                    c1 = (b + 1) * hw_stride
                    stack_ref[:, c0:c1] = jnp.zeros((3 * C, c1 - c0),
                                                    jnp.float32)

        # ---- stage this step's images into the padded buffer ----------------
        # padf and seg are multiples of 128 -> lane-aligned stores.
        for b in range(B_tile):
            b0 = padf + b * seg
            buf_ref[:, b0:b0 + HW] = x_ref[b]

        wh = wh_ref[...]
        wv = wv_ref[...]
        w_idx = widx_ref[...]                       # (1, HW) int32

        # Static tap tables.  Horizontal lane masks depend only on the tap
        # (not the batch element), so build them once outside the b-loop.
        h_taps = []
        for k in range(K_h):
            s = dil * k - pad_w
            if s <= -W or s >= W:                   # tap never in range
                continue
            mask = None if s == 0 else ((w_idx + s >= 0) & (w_idx + s < W))
            h_taps.append((k, s, mask))
        v_taps = []
        for k in range(K_v):
            sh = dil * k - pad_h
            if sh <= -H or sh >= H:
                continue
            v_taps.append((k, sh * W))

        for b in range(B_tile):
            b0 = padf + b * seg
            col = b * hw_stride

            # Horizontal depthwise dilated conv + ReLU.  Column w+s of an
            # adjacent row holds real data, so the per-lane column mask stays.
            acc_h = jnp.zeros((C, HW), jnp.float32)
            for k, s, mask in h_taps:
                tap = buf_ref[:, b0 + s:b0 + s + HW].astype(jnp.float32)
                if mask is not None:
                    tap = jnp.where(mask, tap, 0.0)
                acc_h = acc_h + tap * wh[:, k:k + 1]
            stack_ref[0:C, col:col + HW] = jnp.maximum(acc_h, 0.0)

            # Vertical depthwise dilated conv + ReLU.  A shift of sh rows is
            # sh*W flat elements; out-of-range rows land in the zero pad slabs,
            # so no mask is needed.
            acc_v = jnp.zeros((C, HW), jnp.float32)
            for k, s in v_taps:
                tap = buf_ref[:, b0 + s:b0 + s + HW].astype(jnp.float32)
                acc_v = acc_v + tap * wv[:, k:k + 1]
            stack_ref[C:2 * C, col:col + HW] = jnp.maximum(acc_v, 0.0)

            # Raw input slab for the fusion (padf is a multiple of 128).
            stack_ref[2 * C:3 * C, col:col + HW] = (
                buf_ref[:, b0:b0 + HW].astype(jnp.float32))

        # ---- 1x1 fusion: single (C,3C) x (3C, B_tile*HW) MXU dot + bias ------
        out = jnp.dot(wf_ref[...], stack_ref[...],
                      preferred_element_type=jnp.float32) + b_ref[...]
        for b in range(B_tile):
            col = b * hw_stride
            o_ref[b] = out[:, col:col + HW].astype(o_ref.dtype)

    return kernel


# ----------------------------------------------------------------------------
# Full BigConvBlock forward
# ----------------------------------------------------------------------------
_VMEM_WORKSET_BUDGET = 16 * 2**20      # conservative across v5e / v6e / v7x


def _footprint_bytes(bt, C, HW, hw_stride, seg, padf, K_h, K_v, dbytes):
    io = 2 * 2 * bt * C * HW * dbytes              # x + out blocks, 2x-buffered
    buf = C * (padf + bt * seg) * dbytes           # padded staging scratch
    stack = 3 * C * bt * hw_stride * 4             # f32 fusion staging
    wts = 2 * (dbytes * (C * (K_h + K_v) + 3 * C * C) + 4 * (C + HW))
    return io + buf + stack + wts


@functools.partial(jax.jit, static_argnames=("width", "height"))
def big_conv_block(x, w_h, w_v, w_f, b_f, *, width, height):
    """Forward of BigConvBlock(width, height, channels) on NCHW input x."""
    N, C, H, W = x.shape
    K_h = w_h.shape[1]
    K_v = w_v.shape[1]
    dil = 2
    pad_w, pad_h = width, height
    # The PyTorch module only works (the concat succeeds) if the depthwise
    # convs are shape preserving; the kernel relies on the same condition.
    if (W + 2 * pad_w - dil * (K_h - 1) != W
            or H + 2 * pad_h - dil * (K_v - 1) != H):
        raise ValueError("BigConvBlock requires shape-preserving depthwise "
                         "convs (even width/height with dilation=2).")
    HW = H * W
    dbytes = jnp.dtype(x.dtype).itemsize
    padf = max(_round_up(max(pad_w, pad_h * W), 128), 128)   # lane-aligned pad
    hw_stride = _round_up(HW, 128)                           # lane-aligned
    seg = hw_stride + padf                                   # per-image stride

    # Batch elements per grid step: the largest divisor of N whose per-step
    # VMEM working set fits the budget.  Amortizes per-step overhead and grows
    # the MXU N dimension of the fusion dot.
    B_tile = 1
    for bt in range(1, N + 1):
        if N % bt == 0 and _footprint_bytes(
                bt, C, HW, hw_stride, seg, padf, K_h, K_v,
                dbytes) <= _VMEM_WORKSET_BUDGET:
            B_tile = bt
    footprint = _footprint_bytes(B_tile, C, HW, hw_stride, seg, padf,
                                 K_h, K_v, dbytes)
    # Raise v5e's 16 MiB scoped default; stay within v7x's 64 MiB physical.
    # TODO(synk): add channel/spatial tiling for shapes whose single-image
    # working set exceeds ~48 MiB.
    vmem_limit = int(min(max(2 * footprint + (4 << 20), 32 << 20), 48 << 20))

    x2 = x.reshape(N, C, HW)                      # row-major: free bitcast
    b2 = b_f.reshape(C, 1).astype(jnp.float32)
    w_idx = (jnp.arange(HW, dtype=jnp.int32) % W).reshape(1, HW)

    out = pl.pallas_call(
        _make_fused_kernel(C, H, W, K_h, K_v, pad_w, pad_h, dil, padf,
                           hw_stride, seg, B_tile),
        out_shape=jax.ShapeDtypeStruct((N, C, HW), x.dtype),
        grid=(N // B_tile,),
        in_specs=[
            pl.BlockSpec((B_tile, C, HW), lambda n: (n, 0, 0)),   # x
            pl.BlockSpec((C, K_h), lambda n: (0, 0)),             # w_h
            pl.BlockSpec((C, K_v), lambda n: (0, 0)),             # w_v
            pl.BlockSpec((C, 3 * C), lambda n: (0, 0)),           # w_f
            pl.BlockSpec((C, 1), lambda n: (0, 0)),               # bias
            pl.BlockSpec((1, HW), lambda n: (0, 0)),              # column idx
        ],
        out_specs=pl.BlockSpec((B_tile, C, HW), lambda n: (n, 0, 0)),
        scratch_shapes=[
            pltpu.VMEM((C, padf + B_tile * seg), x.dtype),        # padded buf
            pltpu.VMEM((3 * C, B_tile * hw_stride), jnp.float32), # [h|v|x]
        ],
        compiler_params=pltpu.CompilerParams(
            # "arbitrary": the one-time pad-slab init (program_id == 0) relies
            # on the grid running sequentially on the core owning the scratch.
            dimension_semantics=("arbitrary",),
            vmem_limit_bytes=vmem_limit,
        ),
    )(x2, w_h, w_v, w_f, b2, w_idx)
    return out.reshape(N, C, H, W)


# ----------------------------------------------------------------------------
# Pure-JAX reference (for correctness check)
# ----------------------------------------------------------------------------
def _ref_dwconv(x, w, pad, dil):
    C = x.shape[1]
    kernel = w.reshape(C, 1, 1, w.shape[1])
    return lax.conv_general_dilated(
        x, kernel, window_strides=(1, 1),
        padding=((0, 0), (pad, pad)), rhs_dilation=(1, dil),
        dimension_numbers=("NCHW", "OIHW", "NCHW"), feature_group_count=C)


def ref_forward(x, w_h, w_v, w_f, b_f, width, height):
    h = jax.nn.relu(_ref_dwconv(x, w_h, width, 2))
    v = jax.nn.relu(_ref_dwconv(jnp.transpose(x, (0, 1, 3, 2)), w_v, height, 2))
    v = jnp.transpose(v, (0, 1, 3, 2))
    cat = jnp.concatenate([h, v, x], axis=1)
    out = lax.conv_general_dilated(
        cat, w_f[:, :, None, None], (1, 1), "VALID",
        dimension_numbers=("NCHW", "OIHW", "NCHW"))
    return out + b_f.reshape(1, -1, 1, 1)


if __name__ == "__main__":
    # Small shapes consistent with the module: x is NCHW, width=W, height=H.
    N, C, H, W = 2, 4, 16, 16
    width, height = W, H
    K_h = 2 * (width // 2) + 1    # 17
    K_v = 2 * (height // 2) + 1   # 17

    key = jax.random.PRNGKey(0)
    k0, k1, k2, k3, k4 = jax.random.split(key, 5)
    x = jax.random.normal(k0, (N, C, H, W), jnp.float32)
    # Parameter shapes match the PyTorch module:
    #   depthwise conv weights (C, 1, 1, K) -> stored (C, K)
    #   fusion 1x1 conv weight (C, 3C, 1, 1) -> stored (C, 3C); bias (C,)
    w_h = jax.random.normal(k1, (C, K_h), jnp.float32) * 0.1
    w_v = jax.random.normal(k2, (C, K_v), jnp.float32) * 0.1
    w_f = jax.random.normal(k3, (C, 3 * C), jnp.float32) * 0.1
    b_f = jax.random.normal(k4, (C,), jnp.float32) * 0.1

    out = big_conv_block(x, w_h, w_v, w_f, b_f, width=width, height=height)
    out = jax.block_until_ready(out)

    ref = ref_forward(x, w_h, w_v, w_f, b_f, width, height)
    assert out.shape == (N, C, H, W), out.shape
    err = float(jnp.max(jnp.abs(out - ref)))
    assert jnp.allclose(out, ref, atol=1e-4, rtol=1e-4), err
    print("KERNEL_OK")
</pallas_src>

<mosaic_0001>
module attributes {stable_mosaic.version = 11 : i64} {
  func.func @kernel(%arg0: i32, %arg1: memref<2x4x256xf32, #tpu.memory_space<vmem>>, %arg2: memref<4x17xf32, #tpu.memory_space<vmem>>, %arg3: memref<4x17xf32, #tpu.memory_space<vmem>>, %arg4: memref<4x12xf32, #tpu.memory_space<vmem>>, %arg5: memref<4x1xf32, #tpu.memory_space<vmem>>, %arg6: memref<1x256xi32, #tpu.memory_space<vmem>>, %arg7: memref<2x4x256xf32, #tpu.memory_space<vmem>>, %arg8: memref<4x1280xf32, #tpu.memory_space<vmem>>, %arg9: memref<12x512xf32, #tpu.memory_space<vmem>>) attributes {dimension_semantics = [#tpu.dimension_semantics<arbitrary>], iteration_bounds = array<i64: 1>, scalar_prefetch = 0 : i64, scratch_operands = 2 : i64, tpu.core_type = #tpu.core_type<tc>, window_params = [{transform_indices = @transform_0, window_bounds = array<i64: 2, 4, 256>}, {pipeline_mode = #tpu.pipeline_mode<synchronous>, transform_indices = @transform_1, window_bounds = array<i64: 4, 17>}, {pipeline_mode = #tpu.pipeline_mode<synchronous>, transform_indices = @transform_2, window_bounds = array<i64: 4, 17>}, {pipeline_mode = #tpu.pipeline_mode<synchronous>, transform_indices = @transform_3, window_bounds = array<i64: 4, 12>}, {pipeline_mode = #tpu.pipeline_mode<synchronous>, transform_indices = @transform_4, window_bounds = array<i64: 4, 1>}, {pipeline_mode = #tpu.pipeline_mode<synchronous>, transform_indices = @transform_5, window_bounds = array<i64: 1, 256>}, {transform_indices = @transform_6, window_bounds = array<i64: 2, 4, 256>}]} {
    %c0_i32 = arith.constant 0 : i32
    %0 = arith.cmpi eq, %arg0, %c0_i32 : i32
    %1 = arith.extui %0 : i1 to i32
    %c0_i32_0 = arith.constant 0 : i32
    %2 = arith.cmpi ne, %1, %c0_i32_0 : i32
    scf.if %2 {
      %cst_180 = arith.constant 0.000000e+00 : f32
      %584 = vector.broadcast %cst_180 : f32 to vector<4x256xf32>
      %c0_181 = arith.constant 0 : index
      %c0_182 = arith.constant 0 : index
      %585 = vector.load %arg8[%c0_181, %c0_182] : memref<4x1280xf32, #tpu.memory_space<vmem>>, vector<4x256xf32>
      tpu.vector_store %arg8[%c0_181, %c0_182], %584 {strides = array<i32>} : memref<4x1280xf32, #tpu.memory_space<vmem>>, vector<4x256xf32>,
      %cst_183 = arith.constant 0.000000e+00 : f32
      %586 = vector.broadcast %cst_183 : f32 to vector<4x256xf32>
      %c0_184 = arith.constant 0 : index
      %c512 = arith.constant 512 : index
      %587 = vector.load %arg8[%c0_184, %c512] : memref<4x1280xf32, #tpu.memory_space<vmem>>, vector<4x256xf32>
      tpu.vector_store %arg8[%c0_184, %c512], %586 {strides = array<i32>} : memref<4x1280xf32, #tpu.memory_space<vmem>>, vector<4x256xf32>,
      %cst_185 = arith.constant 0.000000e+00 : f32
      %588 = vector.broadcast %cst_185 : f32 to vector<4x256xf32>
      %c0_186 = arith.constant 0 : index
      %c1024 = arith.constant 1024 : index
      %589 = vector.load %arg8[%c0_186, %c1024] : memref<4x1280xf32, #tpu.memory_space<vmem>>, vector<4x256xf32>
      tpu.vector_store %arg8[%c0_186, %c1024], %588 {strides = array<i32>} : memref<4x1280xf32, #tpu.memory_space<vmem>>, vector<4x256xf32>,
    } else {
    }
    %c0 = arith.constant 0 : index
    %c0_1 = arith.constant 0 : index
    %c0_2 = arith.constant 0 : index
    %3 = vector.load %arg1[%c0, %c0_1, %c0_2] : memref<2x4x256xf32, #tpu.memory_space<vmem>>, vector<1x4x256xf32>
    %4 = vector.shape_cast %3 : vector<1x4x256xf32> to vector<4x256xf32>
    %c0_3 = arith.constant 0 : index
    %c256 = arith.constant 256 : index
    %5 = vector.load %arg8[%c0_3, %c256] : memref<4x1280xf32, #tpu.memory_space<vmem>>, vector<4x256xf32>
    tpu.vector_store %arg8[%c0_3, %c256], %4 {strides = array<i32>} : memref<4x1280xf32, #tpu.memory_space<vmem>>, vector<4x256xf32>,
    %c1 = arith.constant 1 : index
    %c0_4 = arith.constant 0 : index
    %c0_5 = arith.constant 0 : index
    %6 = vector.load %arg1[%c1, %c0_4, %c0_5] : memref<2x4x256xf32, #tpu.memory_space<vmem>>, vector<1x4x256xf32>
    %7 = vector.shape_cast %6 : vector<1x4x256xf32> to vector<4x256xf32>
    %c0_6 = arith.constant 0 : index
    %c768 = arith.constant 768 : index
    %8 = vector.load %arg8[%c0_6, %c768] : memref<4x1280xf32, #tpu.memory_space<vmem>>, vector<4x256xf32>
    tpu.vector_store %arg8[%c0_6, %c768], %7 {strides = array<i32>} : memref<4x1280xf32, #tpu.memory_space<vmem>>, vector<4x256xf32>,
    %c0_7 = arith.constant 0 : index
    %c0_8 = arith.constant 0 : index
    %9 = vector.load %arg2[%c0_7, %c0_8] : memref<4x17xf32, #tpu.memory_space<vmem>>, vector<4x17xf32>
    %c0_9 = arith.constant 0 : index
    %c0_10 = arith.constant 0 : index
    %10 = vector.load %arg3[%c0_9, %c0_10] : memref<4x17xf32, #tpu.memory_space<vmem>>, vector<4x17xf32>
    %c0_11 = arith.constant 0 : index
    %c0_12 = arith.constant 0 : index
    %11 = vector.load %arg6[%c0_11, %c0_12] : memref<1x256xi32, #tpu.memory_space<vmem>>, vector<1x256xi32>
    %c-14_i32 = arith.constant -14 : i32
    %12 = vector.broadcast %c-14_i32 : i32 to vector<1x256xi32>
    %13 = arith.addi %11, %12 : vector<1x256xi32>
    %c0_i32_13 = arith.constant 0 : i32
    %14 = vector.broadcast %c0_i32_13 : i32 to vector<1x256xi32>
    %15 = arith.cmpi sge, %13, %14 : vector<1x256xi32>
    %c-14_i32_14 = arith.constant -14 : i32
    %16 = vector.broadcast %c-14_i32_14 : i32 to vector<1x256xi32>
    %17 = arith.addi %11, %16 : vector<1x256xi32>
    %c16_i32 = arith.constant 16 : i32
    %18 = vector.broadcast %c16_i32 : i32 to vector<1x256xi32>
    %19 = arith.cmpi slt, %17, %18 : vector<1x256xi32>
    %20 = arith.andi %15, %19 : vector<1x256xi1>
    %c-12_i32 = arith.constant -12 : i32
    %21 = vector.broadcast %c-12_i32 : i32 to vector<1x256xi32>
    %22 = arith.addi %11, %21 : vector<1x256xi32>
    %c0_i32_15 = arith.constant 0 : i32
    %23 = vector.broadcast %c0_i32_15 : i32 to vector<1x256xi32>
    %24 = arith.cmpi sge, %22, %23 : vector<1x256xi32>
    %c-12_i32_16 = arith.constant -12 : i32
    %25 = vector.broadcast %c-12_i32_16 : i32 to vector<1x256xi32>
    %26 = arith.addi %11, %25 : vector<1x256xi32>
    %c16_i32_17 = arith.constant 16 : i32
    %27 = vector.broadcast %c16_i32_17 : i32 to vector<1x256xi32>
    %28 = arith.cmpi slt, %26, %27 : vector<1x256xi32>
    %29 = arith.andi %24, %28 : vector<1x256xi1>
    %c-10_i32 = arith.constant -10 : i32
    %30 = vector.broadcast %c-10_i32 : i32 to vector<1x256xi32>
    %31 = arith.addi %11, %30 : vector<1x256xi32>
    %c0_i32_18 = arith.constant 0 : i32
    %32 = vector.broadcast %c0_i32_18 : i32 to vector<1x256xi32>
    %33 = arith.cmpi sge, %31, %32 : vector<1x256xi32>
    %c-10_i32_19 = arith.constant -10 : i32
    %34 = vector.broadcast %c-10_i32_19 : i32 to vector<1x256xi32>
    %35 = arith.addi %11, %34 : vector<1x256xi32>
    %c16_i32_20 = arith.constant 16 : i32
    %36 = vector.broadcast %c16_i32_20 : i32 to vector<1x256xi32>
    %37 = arith.cmpi slt, %35, %36 : vector<1x256xi32>
    %38 = arith.andi %33, %37 : vector<1x256xi1>
    %c-8_i32 = arith.constant -8 : i32
    %39 = vector.broadcast %c-8_i32 : i32 to vector<1x256xi32>
    %40 = arith.addi %11, %39 : vector<1x256xi32>
    %c0_i32_21 = arith.constant 0 : i32
    %41 = vector.broadcast %c0_i32_21 : i32 to vector<1x256xi32>
    %42 = arith.cmpi sge, %40, %41 : vector<1x256xi32>
    %c-8_i32_22 = arith.constant -8 : i32
    %43 = vector.broadcast %c-8_i32_22 : i32 to vector<1x256xi32>
    %44 = arith.addi %11, %43 : vector<1x256xi32>
    %c16_i32_23 = arith.constant 16 : i32
    %45 = vector.broadcast %c16_i32_23 : i32 to vector<1x256xi32>
    %46 = arith.cmpi slt, %44, %45 : vector<1x256xi32>
    %47 = arith.andi %42, %46 : vector<1x256xi1>
    %c-6_i32 = arith.constant -6 : i32
    %48 = vector.broadcast %c-6_i32 : i32 to vector<1x256xi32>
    %49 = arith.addi %11, %48 : vector<1x256xi32>
    %c0_i32_24 = arith.constant 0 : i32
    %50 = vector.broadcast %c0_i32_24 : i32 to vector<1x256xi32>
    %51 = arith.cmpi sge, %49, %50 : vector<1x256xi32>
    %c-6_i32_25 = arith.constant -6 : i32
    %52 = vector.broadcast %c-6_i32_25 : i32 to vector<1x256xi32>
    %53 = arith.addi %11, %52 : vector<1x256xi32>
    %c16_i32_26 = arith.constant 16 : i32
    %54 = vector.broadcast %c16_i32_26 : i32 to vector<1x256xi32>
    %55 = arith.cmpi slt, %53, %54 : vector<1x256xi32>
    %56 = arith.andi %51, %55 : vector<1x256xi1>
    %c-4_i32 = arith.constant -4 : i32
    %57 = vector.broadcast %c-4_i32 : i32 to vector<1x256xi32>
    %58 = arith.addi %11, %57 : vector<1x256xi32>
    %c0_i32_27 = arith.constant 0 : i32
    %59 = vector.broadcast %c0_i32_27 : i32 to vector<1x256xi32>
    %60 = arith.cmpi sge, %58, %59 : vector<1x256xi32>
    %c-4_i32_28 = arith.constant -4 : i32
    %61 = vector.broadcast %c-4_i32_28 : i32 to vector<1x256xi32>
    %62 = arith.addi %11, %61 : vector<1x256xi32>
    %c16_i32_29 = arith.constant 16 : i32
    %63 = vector.broadcast %c16_i32_29 : i32 to vector<1x256xi32>
    %64 = arith.cmpi slt, %62, %63 : vector<1x256xi32>
    %65 = arith.andi %60, %64 : vector<1x256xi1>
    %c-2_i32 = arith.constant -2 : i32
    %66 = vector.broadcast %c-2_i32 : i32 to vector<1x256xi32>
    %67 = arith.addi %11, %66 : vector<1x256xi32>
    %c0_i32_30 = arith.constant 0 : i32
    %68 = vector.broadcast %c0_i32_30 : i32 to vector<1x256xi32>
    %69 = arith.cmpi sge, %67, %68 : vector<1x256xi32>
    %c-2_i32_31 = arith.constant -2 : i32
    %70 = vector.broadcast %c-2_i32_31 : i32 to vector<1x256xi32>
    %71 = arith.addi %11, %70 : vector<1x256xi32>
    %c16_i32_32 = arith.constant 16 : i32
    %72 = vector.broadcast %c16_i32_32 : i32 to vector<1x256xi32>
    %73 = arith.cmpi slt, %71, %72 : vector<1x256xi32>
    %74 = arith.andi %69, %73 : vector<1x256xi1>
    %c2_i32 = arith.constant 2 : i32
    %75 = vector.broadcast %c2_i32 : i32 to vector<1x256xi32>
    %76 = arith.addi %11, %75 : vector<1x256xi32>
    %c0_i32_33 = arith.constant 0 : i32
    %77 = vector.broadcast %c0_i32_33 : i32 to vector<1x256xi32>
    %78 = arith.cmpi sge, %76, %77 : vector<1x256xi32>
    %c2_i32_34 = arith.constant 2 : i32
    %79 = vector.broadcast %c2_i32_34 : i32 to vector<1x256xi32>
    %80 = arith.addi %11, %79 : vector<1x256xi32>
    %c16_i32_35 = arith.constant 16 : i32
    %81 = vector.broadcast %c16_i32_35 : i32 to vector<1x256xi32>
    %82 = arith.cmpi slt, %80, %81 : vector<1x256xi32>
    %83 = arith.andi %78, %82 : vector<1x256xi1>
    %c4_i32 = arith.constant 4 : i32
    %84 = vector.broadcast %c4_i32 : i32 to vector<1x256xi32>
    %85 = arith.addi %11, %84 : vector<1x256xi32>
    %c0_i32_36 = arith.constant 0 : i32
    %86 = vector.broadcast %c0_i32_36 : i32 to vector<1x256xi32>
    %87 = arith.cmpi sge, %85, %86 : vector<1x256xi32>
    %c4_i32_37 = arith.constant 4 : i32
    %88 = vector.broadcast %c4_i32_37 : i32 to vector<1x256xi32>
    %89 = arith.addi %11, %88 : vector<1x256xi32>
    %c16_i32_38 = arith.constant 16 : i32
    %90 = vector.broadcast %c16_i32_38 : i32 to vector<1x256xi32>
    %91 = arith.cmpi slt, %89, %90 : vector<1x256xi32>
    %92 = arith.andi %87, %91 : vector<1x256xi1>
    %c6_i32 = arith.constant 6 : i32
    %93 = vector.broadcast %c6_i32 : i32 to vector<1x256xi32>
    %94 = arith.addi %11, %93 : vector<1x256xi32>
    %c0_i32_39 = arith.constant 0 : i32
    %95 = vector.broadcast %c0_i32_39 : i32 to vector<1x256xi32>
    %96 = arith.cmpi sge, %94, %95 : vector<1x256xi32>
    %c6_i32_40 = arith.constant 6 : i32
    %97 = vector.broadcast %c6_i32_40 : i32 to vector<1x256xi32>
    %98 = arith.addi %11, %97 : vector<1x256xi32>
    %c16_i32_41 = arith.constant 16 : i32
    %99 = vector.broadcast %c16_i32_41 : i32 to vector<1x256xi32>
    %100 = arith.cmpi slt, %98, %99 : vector<1x256xi32>
    %101 = arith.andi %96, %100 : vector<1x256xi1>
    %c8_i32 = arith.constant 8 : i32
    %102 = vector.broadcast %c8_i32 : i32 to vector<1x256xi32>
    %103 = arith.addi %11, %102 : vector<1x256xi32>
    %c0_i32_42 = arith.constant 0 : i32
    %104 = vector.broadcast %c0_i32_42 : i32 to vector<1x256xi32>
    %105 = arith.cmpi sge, %103, %104 : vector<1x256xi32>
    %c8_i32_43 = arith.constant 8 : i32
    %106 = vector.broadcast %c8_i32_43 : i32 to vector<1x256xi32>
    %107 = arith.addi %11, %106 : vector<1x256xi32>
    %c16_i32_44 = arith.constant 16 : i32
    %108 = vector.broadcast %c16_i32_44 : i32 to vector<1x256xi32>
    %109 = arith.cmpi slt, %107, %108 : vector<1x256xi32>
    %110 = arith.andi %105, %109 : vector<1x256xi1>
    %c10_i32 = arith.constant 10 : i32
    %111 = vector.broadcast %c10_i32 : i32 to vector<1x256xi32>
    %112 = arith.addi %11, %111 : vector<1x256xi32>
    %c0_i32_45 = arith.constant 0 : i32
    %113 = vector.broadcast %c0_i32_45 : i32 to vector<1x256xi32>
    %114 = arith.cmpi sge, %112, %113 : vector<1x256xi32>
    %c10_i32_46 = arith.constant 10 : i32
    %115 = vector.broadcast %c10_i32_46 : i32 to vector<1x256xi32>
    %116 = arith.addi %11, %115 : vector<1x256xi32>
    %c16_i32_47 = arith.constant 16 : i32
    %117 = vector.broadcast %c16_i32_47 : i32 to vector<1x256xi32>
    %118 = arith.cmpi slt, %116, %117 : vector<1x256xi32>
    %119 = arith.andi %114, %118 : vector<1x256xi1>
    %c12_i32 = arith.constant 12 : i32
    %120 = vector.broadcast %c12_i32 : i32 to vector<1x256xi32>
    %121 = arith.addi %11, %120 : vector<1x256xi32>
    %c0_i32_48 = arith.constant 0 : i32
    %122 = vector.broadcast %c0_i32_48 : i32 to vector<1x256xi32>
    %123 = arith.cmpi sge, %121, %122 : vector<1x256xi32>
    %c12_i32_49 = arith.constant 12 : i32
    %124 = vector.broadcast %c12_i32_49 : i32 to vector<1x256xi32>
    %125 = arith.addi %11, %124 : vector<1x256xi32>
    %c16_i32_50 = arith.constant 16 : i32
    %126 = vector.broadcast %c16_i32_50 : i32 to vector<1x256xi32>
    %127 = arith.cmpi slt, %125, %126 : vector<1x256xi32>
    %128 = arith.andi %123, %127 : vector<1x256xi1>
    %c14_i32 = arith.constant 14 : i32
    %129 = vector.broadcast %c14_i32 : i32 to vector<1x256xi32>
    %130 = arith.addi %11, %129 : vector<1x256xi32>
    %c0_i32_51 = arith.constant 0 : i32
    %131 = vector.broadcast %c0_i32_51 : i32 to vector<1x256xi32>
    %132 = arith.cmpi sge, %130, %131 : vector<1x256xi32>
    %c14_i32_52 = arith.constant 14 : i32
    %133 = vector.broadcast %c14_i32_52 : i32 to vector<1x256xi32>
    %134 = arith.addi %11, %133 : vector<1x256xi32>
    %c16_i32_53 = arith.constant 16 : i32
    %135 = vector.broadcast %c16_i32_53 : i32 to vector<1x256xi32>
    %136 = arith.cmpi slt, %134, %135 : vector<1x256xi32>
    %137 = arith.andi %132, %136 : vector<1x256xi1>
    %cst = arith.constant 0.000000e+00 : f32
    %138 = vector.broadcast %cst : f32 to vector<4x256xf32>
    %c0_54 = arith.constant 0 : index
    %c242 = arith.constant 242 : index
    %139 = vector.load %arg8[%c0_54, %c242] : memref<4x1280xf32, #tpu.memory_space<vmem>>, vector<4x256xf32>
    %cst_55 = arith.constant 0.000000e+00 : f32
    %140 = vector.shape_cast %20 : vector<1x256xi1> to vector<1x256xi1>
    %141 = vector.broadcast %140 : vector<1x256xi1> to vector<4x256xi1>
    %142 = vector.broadcast %cst_55 : f32 to vector<4x256xf32>
    %143 = arith.select %141, %139, %142 : vector<4x256xi1>, vector<4x256xf32>
    %144 = vector.extract_strided_slice %9 {offsets = [0, 1], sizes = [4, 1], strides = [1, 1]} : vector<4x17xf32> to vector<4x1xf32>
    %145 = vector.broadcast %144 : vector<4x1xf32> to vector<4x256xf32>
    %146 = arith.mulf %143, %145 : vector<4x256xf32>
    %147 = arith.addf %138, %146 : vector<4x256xf32>
    %c0_56 = arith.constant 0 : index
    %c244 = arith.constant 244 : index
    %148 = vector.load %arg8[%c0_56, %c244] : memref<4x1280xf32, #tpu.memory_space<vmem>>, vector<4x256xf32>
    %cst_57 = arith.constant 0.000000e+00 : f32
    %149 = vector.shape_cast %29 : vector<1x256xi1> to vector<1x256xi1>
    %150 = vector.broadcast %149 : vector<1x256xi1> to vector<4x256xi1>
    %151 = vector.broadcast %cst_57 : f32 to vector<4x256xf32>
    %152 = arith.select %150, %148, %151 : vector<4x256xi1>, vector<4x256xf32>
    %153 = vector.extract_strided_slice %9 {offsets = [0, 2], sizes = [4, 1], strides = [1, 1]} : vector<4x17xf32> to vector<4x1xf32>
    %154 = vector.broadcast %153 : vector<4x1xf32> to vector<4x256xf32>
    %155 = arith.mulf %152, %154 : vector<4x256xf32>
    %156 = arith.addf %147, %155 : vector<4x256xf32>
    %c0_58 = arith.constant 0 : index
    %c246 = arith.constant 246 : index
    %157 = vector.load %arg8[%c0_58, %c246] : memref<4x1280xf32, #tpu.memory_space<vmem>>, vector<4x256xf32>
    %cst_59 = arith.constant 0.000000e+00 : f32
    %158 = vector.shape_cast %38 : vector<1x256xi1> to vector<1x256xi1>
    %159 = vector.broadcast %158 : vector<1x256xi1> to vector<4x256xi1>
    %160 = vector.broadcast %cst_59 : f32 to vector<4x256xf32>
    %161 = arith.select %159, %157, %160 : vector<4x256xi1>, vector<4x256xf32>
    %162 = vector.extract_strided_slice %9 {offsets = [0, 3], sizes = [4, 1], strides = [1, 1]} : vector<4x17xf32> to vector<4x1xf32>
    %163 = vector.broadcast %162 : vector<4x1xf32> to vector<4x256xf32>
    %164 = arith.mulf %161, %163 : vector<4x256xf32>
    %165 = arith.addf %156, %164 : vector<4x256xf32>
    %c0_60 = arith.constant 0 : index
    %c248 = arith.constant 248 : index
    %166 = vector.load %arg8[%c0_60, %c248] : memref<4x1280xf32, #tpu.memory_space<vmem>>, vector<4x256xf32>
    %cst_61 = arith.constant 0.000000e+00 : f32
    %167 = vector.shape_cast %47 : vector<1x256xi1> to vector<1x256xi1>
    %168 = vector.broadcast %167 : vector<1x256xi1> to vector<4x256xi1>
    %169 = vector.broadcast %cst_61 : f32 to vector<4x256xf32>
    %170 = arith.select %168, %166, %169 : vector<4x256xi1>, vector<4x256xf32>
    %171 = vector.extract_strided_slice %9 {offsets = [0, 4], sizes = [4, 1], strides = [1, 1]} : vector<4x17xf32> to vector<4x1xf32>
    %172 = vector.broadcast %171 : vector<4x1xf32> to vector<4x256xf32>
    %173 = arith.mulf %170, %172 : vector<4x256xf32>
    %174 = arith.addf %165, %173 : vector<4x256xf32>
    %c0_62 = arith.constant 0 : index
    %c250 = arith.constant 250 : index
    %175 = vector.load %arg8[%c0_62, %c250] : memref<4x1280xf32, #tpu.memory_space<vmem>>, vector<4x256xf32>
    %cst_63 = arith.constant 0.000000e+00 : f32
    %176 = vector.shape_cast %56 : vector<1x256xi1> to vector<1x256xi1>
    %177 = vector.broadcast %176 : vector<1x256xi1> to vector<4x256xi1>
    %178 = vector.broadcast %cst_63 : f32 to vector<4x256xf32>
    %179 = arith.select %177, %175, %178 : vector<4x256xi1>, vector<4x256xf32>
    %180 = vector.extract_strided_slice %9 {offsets = [0, 5], sizes = [4, 1], strides = [1, 1]} : vector<4x17xf32> to vector<4x1xf32>
    %181 = vector.broadcast %180 : vector<4x1xf32> to vector<4x256xf32>
    %182 = arith.mulf %179, %181 : vector<4x256xf32>
    %183 = arith.addf %174, %182 : vector<4x256xf32>
    %c0_64 = arith.constant 0 : index
    %c252 = arith.constant 252 : index
    %184 = vector.load %arg8[%c0_64, %c252] : memref<4x1280xf32, #tpu.memory_space<vmem>>, vector<4x256xf32>
    %cst_65 = arith.constant 0.000000e+00 : f32
    %185 = vector.shape_cast %65 : vector<1x256xi1> to vector<1x256xi1>
    %186 = vector.broadcast %185 : vector<1x256xi1> to vector<4x256xi1>
    %187 = vector.broadcast %cst_65 : f32 to vector<4x256xf32>
    %188 = arith.select %186, %184, %187 : vector<4x256xi1>, vector<4x256xf32>
    %189 = vector.extract_strided_slice %9 {offsets = [0, 6], sizes = [4, 1], strides = [1, 1]} : vector<4x17xf32> to vector<4x1xf32>
    %190 = vector.broadcast %189 : vector<4x1xf32> to vector<4x256xf32>
    %191 = arith.mulf %188, %190 : vector<4x256xf32>
    %192 = arith.addf %183, %191 : vector<4x256xf32>
    %c0_66 = arith.constant 0 : index
    %c254 = arith.constant 254 : index
    %193 = vector.load %arg8[%c0_66, %c254] : memref<4x1280xf32, #tpu.memory_space<vmem>>, vector<4x256xf32>
    %cst_67 = arith.constant 0.000000e+00 : f32
    %194 = vector.shape_cast %74 : vector<1x256xi1> to vector<1x256xi1>
    %195 = vector.broadcast %194 : vector<1x256xi1> to vector<4x256xi1>
    %196 = vector.broadcast %cst_67 : f32 to vector<4x256xf32>
    %197 = arith.select %195, %193, %196 : vector<4x256xi1>, vector<4x256xf32>
    %198 = vector.extract_strided_slice %9 {offsets = [0, 7], sizes = [4, 1], strides = [1, 1]} : vector<4x17xf32> to vector<4x1xf32>
    %199 = vector.broadcast %198 : vector<4x1xf32> to vector<4x256xf32>
    %200 = arith.mulf %197, %199 : vector<4x256xf32>
    %201 = arith.addf %192, %200 : vector<4x256xf32>
    %c0_68 = arith.constant 0 : index
    %c256_69 = arith.constant 256 : index
    %202 = vector.load %arg8[%c0_68, %c256_69] : memref<4x1280xf32, #tpu.memory_space<vmem>>, vector<4x256xf32>
    %203 = vector.extract_strided_slice %9 {offsets = [0, 8], sizes = [4, 1], strides = [1, 1]} : vector<4x17xf32> to vector<4x1xf32>
    %204 = vector.broadcast %203 : vector<4x1xf32> to vector<4x256xf32>
    %205 = arith.mulf %202, %204 : vector<4x256xf32>
    %206 = arith.addf %201, %205 : vector<4x256xf32>
    %c0_70 = arith.constant 0 : index
    %c258 = arith.constant 258 : index
    %207 = vector.load %arg8[%c0_70, %c258] : memref<4x1280xf32, #tpu.memory_space<vmem>>, vector<4x256xf32>
    %cst_71 = arith.constant 0.000000e+00 : f32
    %208 = vector.shape_cast %83 : vector<1x256xi1> to vector<1x256xi1>
    %209 = vector.broadcast %208 : vector<1x256xi1> to vector<4x256xi1>
    %210 = vector.broadcast %cst_71 : f32 to vector<4x256xf32>
    %211 = arith.select %209, %207, %210 : vector<4x256xi1>, vector<4x256xf32>
    %212 = vector.extract_strided_slice %9 {offsets = [0, 9], sizes = [4, 1], strides = [1, 1]} : vector<4x17xf32> to vector<4x1xf32>
    %213 = vector.broadcast %212 : vector<4x1xf32> to vector<4x256xf32>
    %214 = arith.mulf %211, %213 : vector<4x256xf32>
    %215 = arith.addf %206, %214 : vector<4x256xf32>
    %c0_72 = arith.constant 0 : index
    %c260 = arith.constant 260 : index
    %216 = vector.load %arg8[%c0_72, %c260] : memref<4x1280xf32, #tpu.memory_space<vmem>>, vector<4x256xf32>
    %cst_73 = arith.constant 0.000000e+00 : f32
    %217 = vector.shape_cast %92 : vector<1x256xi1> to vector<1x256xi1>
    %218 = vector.broadcast %217 : vector<1x256xi1> to vector<4x256xi1>
    %219 = vector.broadcast %cst_73 : f32 to vector<4x256xf32>
    %220 = arith.select %218, %216, %219 : vector<4x256xi1>, vector<4x256xf32>
    %221 = vector.extract_strided_slice %9 {offsets = [0, 10], sizes = [4, 1], strides = [1, 1]} : vector<4x17xf32> to vector<4x1xf32>
    %222 = vector.broadcast %221 : vector<4x1xf32> to vector<4x256xf32>
    %223 = arith.mulf %220, %222 : vector<4x256xf32>
    %224 = arith.addf %215, %223 : vector<4x256xf32>
    %c0_74 = arith.constant 0 : index
    %c262 = arith.constant 262 : index
    %225 = vector.load %arg8[%c0_74, %c262] : memref<4x1280xf32, #tpu.memory_space<vmem>>, vector<4x256xf32>
    %cst_75 = arith.constant 0.000000e+00 : f32
    %226 = vector.shape_cast %101 : vector<1x256xi1> to vector<1x256xi1>
    %227 = vector.broadcast %226 : vector<1x256xi1> to vector<4x256xi1>
    %228 = vector.broadcast %cst_75 : f32 to vector<4x256xf32>
    %229 = arith.select %227, %225, %228 : vector<4x256xi1>, vector<4x256xf32>
    %230 = vector.extract_strided_slice %9 {offsets = [0, 11], sizes = [4, 1], strides = [1, 1]} : vector<4x17xf32> to vector<4x1xf32>
    %231 = vector.broadcast %230 : vector<4x1xf32> to vector<4x256xf32>
    %232 = arith.mulf %229, %231 : vector<4x256xf32>
    %233 = arith.addf %224, %232 : vector<4x256xf32>
    %c0_76 = arith.constant 0 : index
    %c264 = arith.constant 264 : index
    %234 = vector.load %arg8[%c0_76, %c264] : memref<4x1280xf32, #tpu.memory_space<vmem>>, vector<4x256xf32>
    %cst_77 = arith.constant 0.000000e+00 : f32
    %235 = vector.shape_cast %110 : vector<1x256xi1> to vector<1x256xi1>
    %236 = vector.broadcast %235 : vector<1x256xi1> to vector<4x256xi1>
    %237 = vector.broadcast %cst_77 : f32 to vector<4x256xf32>
    %238 = arith.select %236, %234, %237 : vector<4x256xi1>, vector<4x256xf32>
    %239 = vector.extract_strided_slice %9 {offsets = [0, 12], sizes = [4, 1], strides = [1, 1]} : vector<4x17xf32> to vector<4x1xf32>
    %240 = vector.broadcast %239 : vector<4x1xf32> to vector<4x256xf32>
    %241 = arith.mulf %238, %240 : vector<4x256xf32>
    %242 = arith.addf %233, %241 : vector<4x256xf32>
    %c0_78 = arith.constant 0 : index
    %c266 = arith.constant 266 : index
    %243 = vector.load %arg8[%c0_78, %c266] : memref<4x1280xf32, #tpu.memory_space<vmem>>, vector<4x256xf32>
    %cst_79 = arith.constant 0.000000e+00 : f32
    %244 = vector.shape_cast %119 : vector<1x256xi1> to vector<1x256xi1>
    %245 = vector.broadcast %244 : vector<1x256xi1> to vector<4x256xi1>
    %246 = vector.broadcast %cst_79 : f32 to vector<4x256xf32>
    %247 = arith.select %245, %243, %246 : vector<4x256xi1>, vector<4x256xf32>
    %248 = vector.extract_strided_slice %9 {offsets = [0, 13], sizes = [4, 1], strides = [1, 1]} : vector<4x17xf32> to vector<4x1xf32>
    %249 = vector.broadcast %248 : vector<4x1xf32> to vector<4x256xf32>
    %250 = arith.mulf %247, %249 : vector<4x256xf32>
    %251 = arith.addf %242, %250 : vector<4x256xf32>
    %c0_80 = arith.constant 0 : index
    %c268 = arith.constant 268 : index
    %252 = vector.load %arg8[%c0_80, %c268] : memref<4x1280xf32, #tpu.memory_space<vmem>>, vector<4x256xf32>
    %cst_81 = arith.constant 0.000000e+00 : f32
    %253 = vector.shape_cast %128 : vector<1x256xi1> to vector<1x256xi1>
    %254 = vector.broadcast %253 : vector<1x256xi1> to vector<4x256xi1>
    %255 = vector.broadcast %cst_81 : f32 to vector<4x256xf32>
    %256 = arith.select %254, %252, %255 : vector<4x256xi1>, vector<4x256xf32>
    %257 = vector.extract_strided_slice %9 {offsets = [0, 14], sizes = [4, 1], strides = [1, 1]} : vector<4x17xf32> to vector<4x1xf32>
    %258 = vector.broadcast %257 : vector<4x1xf32> to vector<4x256xf32>
    %259 = arith.mulf %256, %258 : vector<4x256xf32>
    %260 = arith.addf %251, %259 : vector<4x256xf32>
    %c0_82 = arith.constant 0 : index
    %c270 = arith.constant 270 : index
    %261 = vector.load %arg8[%c0_82, %c270] : memref<4x1280xf32, #tpu.memory_space<vmem>>, vector<4x256xf32>
    %cst_83 = arith.constant 0.000000e+00 : f32
    %262 = vector.shape_cast %137 : vector<1x256xi1> to vector<1x256xi1>
    %263 = vector.broadcast %262 : vector<1x256xi1> to vector<4x256xi1>
    %264 = vector.broadcast %cst_83 : f32 to vector<4x256xf32>
    %265 = arith.select %263, %261, %264 : vector<4x256xi1>, vector<4x256xf32>
    %266 = vector.extract_strided_slice %9 {offsets = [0, 15], sizes = [4, 1], strides = [1, 1]} : vector<4x17xf32> to vector<4x1xf32>
    %267 = vector.broadcast %266 : vector<4x1xf32> to vector<4x256xf32>
    %268 = arith.mulf %265, %267 : vector<4x256xf32>
    %269 = arith.addf %260, %268 : vector<4x256xf32>
    %cst_84 = arith.constant 0.000000e+00 : f32
    %270 = vector.broadcast %cst_84 : f32 to vector<4x256xf32>
    %271 = arith.maximumf %269, %270 : vector<4x256xf32>
    %c0_85 = arith.constant 0 : index
    %c0_86 = arith.constant 0 : index
    %272 = vector.load %arg9[%c0_85, %c0_86] : memref<12x512xf32, #tpu.memory_space<vmem>>, vector<4x256xf32>
    tpu.vector_store %arg9[%c0_85, %c0_86], %271 {strides = array<i32>} : memref<12x512xf32, #tpu.memory_space<vmem>>, vector<4x256xf32>,
    %cst_87 = arith.constant 0.000000e+00 : f32
    %273 = vector.broadcast %cst_87 : f32 to vector<4x256xf32>
    %c0_88 = arith.constant 0 : index
    %c32 = arith.constant 32 : index
    %274 = vector.load %arg8[%c0_88, %c32] : memref<4x1280xf32, #tpu.memory_space<vmem>>, vector<4x256xf32>
    %275 = vector.extract_strided_slice %10 {offsets = [0, 1], sizes = [4, 1], strides = [1, 1]} : vector<4x17xf32> to vector<4x1xf32>
    %276 = vector.broadcast %275 : vector<4x1xf32> to vector<4x256xf32>
    %277 = arith.mulf %274, %276 : vector<4x256xf32>
    %278 = arith.addf %273, %277 : vector<4x256xf32>
    %c0_89 = arith.constant 0 : index
    %c64 = arith.constant 64 : index
    %279 = vector.load %arg8[%c0_89, %c64] : memref<4x1280xf32, #tpu.memory_space<vmem>>, vector<4x256xf32>
    %280 = vector.extract_strided_slice %10 {offsets = [0, 2], sizes = [4, 1], strides = [1, 1]} : vector<4x17xf32> to vector<4x1xf32>
    %281 = vector.broadcast %280 : vector<4x1xf32> to vector<4x256xf32>
    %282 = arith.mulf %279, %281 : vector<4x256xf32>
    %283 = arith.addf %278, %282 : vector<4x256xf32>
    %c0_90 = arith.constant 0 : index
    %c96 = arith.constant 96 : index
    %284 = vector.load %arg8[%c0_90, %c96] : memref<4x1280xf32, #tpu.memory_space<vmem>>, vector<4x256xf32>
    %285 = vector.extract_strided_slice %10 {offsets = [0, 3], sizes = [4, 1], strides = [1, 1]} : vector<4x17xf32> to vector<4x1xf32>
    %286 = vector.broadcast %285 : vector<4x1xf32> to vector<4x256xf32>
    %287 = arith.mulf %284, %286 : vector<4x256xf32>
    %288 = arith.addf %283, %287 : vector<4x256xf32>
    %c0_91 = arith.constant 0 : index
    %c128 = arith.constant 128 : index
    %289 = vector.load %arg8[%c0_91, %c128] : memref<4x1280xf32, #tpu.memory_space<vmem>>, vector<4x256xf32>
    %290 = vector.extract_strided_slice %10 {offsets = [0, 4], sizes = [4, 1], strides = [1, 1]} : vector<4x17xf32> to vector<4x1xf32>
    %291 = vector.broadcast %290 : vector<4x1xf32> to vector<4x256xf32>
    %292 = arith.mulf %289, %291 : vector<4x256xf32>
    %293 = arith.addf %288, %292 : vector<4x256xf32>
    %c0_92 = arith.constant 0 : index
    %c160 = arith.constant 160 : index
    %294 = vector.load %arg8[%c0_92, %c160] : memref<4x1280xf32, #tpu.memory_space<vmem>>, vector<4x256xf32>
    %295 = vector.extract_strided_slice %10 {offsets = [0, 5], sizes = [4, 1], strides = [1, 1]} : vector<4x17xf32> to vector<4x1xf32>
    %296 = vector.broadcast %295 : vector<4x1xf32> to vector<4x256xf32>
    %297 = arith.mulf %294, %296 : vector<4x256xf32>
    %298 = arith.addf %293, %297 : vector<4x256xf32>
    %c0_93 = arith.constant 0 : index
    %c192 = arith.constant 192 : index
    %299 = vector.load %arg8[%c0_93, %c192] : memref<4x1280xf32, #tpu.memory_space<vmem>>, vector<4x256xf32>
    %300 = vector.extract_strided_slice %10 {offsets = [0, 6], sizes = [4, 1], strides = [1, 1]} : vector<4x17xf32> to vector<4x1xf32>
    %301 = vector.broadcast %300 : vector<4x1xf32> to vector<4x256xf32>
    %302 = arith.mulf %299, %301 : vector<4x256xf32>
    %303 = arith.addf %298, %302 : vector<4x256xf32>
    %c0_94 = arith.constant 0 : index
    %c224 = arith.constant 224 : index
    %304 = vector.load %arg8[%c0_94, %c224] : memref<4x1280xf32, #tpu.memory_space<vmem>>, vector<4x256xf32>
    %305 = vector.extract_strided_slice %10 {offsets = [0, 7], sizes = [4, 1], strides = [1, 1]} : vector<4x17xf32> to vector<4x1xf32>
    %306 = vector.broadcast %305 : vector<4x1xf32> to vector<4x256xf32>
    %307 = arith.mulf %304, %306 : vector<4x256xf32>
    %308 = arith.addf %303, %307 : vector<4x256xf32>
    %c0_95 = arith.constant 0 : index
    %c256_96 = arith.constant 256 : index
    %309 = vector.load %arg8[%c0_95, %c256_96] : memref<4x1280xf32, #tpu.memory_space<vmem>>, vector<4x256xf32>
    %310 = vector.extract_strided_slice %10 {offsets = [0, 8], sizes = [4, 1], strides = [1, 1]} : vector<4x17xf32> to vector<4x1xf32>
    %311 = vector.broadcast %310 : vector<4x1xf32> to vector<4x256xf32>
    %312 = arith.mulf %309, %311 : vector<4x256xf32>
    %313 = arith.addf %308, %312 : vector<4x256xf32>
    %c0_97 = arith.constant 0 : index
    %c288 = arith.constant 288 : index
    %314 = vector.load %arg8[%c0_97, %c288] : memref<4x1280xf32, #tpu.memory_space<vmem>>, vector<4x256xf32>
    %315 = vector.extract_strided_slice %10 {offsets = [0, 9], sizes = [4, 1], strides = [1, 1]} : vector<4x17xf32> to vector<4x1xf32>
    %316 = vector.broadcast %315 : vector<4x1xf32> to vector<4x256xf32>
    %317 = arith.mulf %314, %316 : vector<4x256xf32>
    %318 = arith.addf %313, %317 : vector<4x256xf32>
    %c0_98 = arith.constant 0 : index
    %c320 = arith.constant 320 : index
    %319 = vector.load %arg8[%c0_98, %c320] : memref<4x1280xf32, #tpu.memory_space<vmem>>, vector<4x256xf32>
    %320 = vector.extract_strided_slice %10 {offsets = [0, 10], sizes = [4, 1], strides = [1, 1]} : vector<4x17xf32> to vector<4x1xf32>
    %321 = vector.broadcast %320 : vector<4x1xf32> to vector<4x256xf32>
    %322 = arith.mulf %319, %321 : vector<4x256xf32>
    %323 = arith.addf %318, %322 : vector<4x256xf32>
    %c0_99 = arith.constant 0 : index
    %c352 = arith.constant 352 : index
    %324 = vector.load %arg8[%c0_99, %c352] : memref<4x1280xf32, #tpu.memory_space<vmem>>, vector<4x256xf32>
    %325 = vector.extract_strided_slice %10 {offsets = [0, 11], sizes = [4, 1], strides = [1, 1]} : vector<4x17xf32> to vector<4x1xf32>
    %326 = vector.broadcast %325 : vector<4x1xf32> to vector<4x256xf32>
    %327 = arith.mulf %324, %326 : vector<4x256xf32>
    %328 = arith.addf %323, %327 : vector<4x256xf32>
    %c0_100 = arith.constant 0 : index
    %c384 = arith.constant 384 : index
    %329 = vector.load %arg8[%c0_100, %c384] : memref<4x1280xf32, #tpu.memory_space<vmem>>, vector<4x256xf32>
    %330 = vector.extract_strided_slice %10 {offsets = [0, 12], sizes = [4, 1], strides = [1, 1]} : vector<4x17xf32> to vector<4x1xf32>
    %331 = vector.broadcast %330 : vector<4x1xf32> to vector<4x256xf32>
    %332 = arith.mulf %329, %331 : vector<4x256xf32>
    %333 = arith.addf %328, %332 : vector<4x256xf32>
    %c0_101 = arith.constant 0 : index
    %c416 = arith.constant 416 : index
    %334 = vector.load %arg8[%c0_101, %c416] : memref<4x1280xf32, #tpu.memory_space<vmem>>, vector<4x256xf32>
    %335 = vector.extract_strided_slice %10 {offsets = [0, 13], sizes = [4, 1], strides = [1, 1]} : vector<4x17xf32> to vector<4x1xf32>
    %336 = vector.broadcast %335 : vector<4x1xf32> to vector<4x256xf32>
    %337 = arith.mulf %334, %336 : vector<4x256xf32>
    %338 = arith.addf %333, %337 : vector<4x256xf32>
    %c0_102 = arith.constant 0 : index
    %c448 = arith.constant 448 : index
    %339 = vector.load %arg8[%c0_102, %c448] : memref<4x1280xf32, #tpu.memory_space<vmem>>, vector<4x256xf32>
    %340 = vector.extract_strided_slice %10 {offsets = [0, 14], sizes = [4, 1], strides = [1, 1]} : vector<4x17xf32> to vector<4x1xf32>
    %341 = vector.broadcast %340 : vector<4x1xf32> to vector<4x256xf32>
    %342 = arith.mulf %339, %341 : vector<4x256xf32>
    %343 = arith.addf %338, %342 : vector<4x256xf32>
    %c0_103 = arith.constant 0 : index
    %c480 = arith.constant 480 : index
    %344 = vector.load %arg8[%c0_103, %c480] : memref<4x1280xf32, #tpu.memory_space<vmem>>, vector<4x256xf32>
    %345 = vector.extract_strided_slice %10 {offsets = [0, 15], sizes = [4, 1], strides = [1, 1]} : vector<4x17xf32> to vector<4x1xf32>
    %346 = vector.broadcast %345 : vector<4x1xf32> to vector<4x256xf32>
    %347 = arith.mulf %344, %346 : vector<4x256xf32>
    %348 = arith.addf %343, %347 : vector<4x256xf32>
    %cst_104 = arith.constant 0.000000e+00 : f32
    %349 = vector.broadcast %cst_104 : f32 to vector<4x256xf32>
    %350 = arith.maximumf %348, %349 : vector<4x256xf32>
    %c4 = arith.constant 4 : index
    %c0_105 = arith.constant 0 : index
    %351 = vector.load %arg9[%c4, %c0_105] : memref<12x512xf32, #tpu.memory_space<vmem>>, vector<4x256xf32>
    tpu.vector_store %arg9[%c4, %c0_105], %350 {strides = array<i32>} : memref<12x512xf32, #tpu.memory_space<vmem>>, vector<4x256xf32>,
    %c0_106 = arith.constant 0 : index
    %c256_107 = arith.constant 256 : index
    %352 = vector.load %arg8[%c0_106, %c256_107] : memref<4x1280xf32, #tpu.memory_space<vmem>>, vector<4x256xf32>
    %c8 = arith.constant 8 : index
    %c0_108 = arith.constant 0 : index
    %353 = vector.load %arg9[%c8, %c0_108] : memref<12x512xf32, #tpu.memory_space<vmem>>, vector<4x256xf32>
    tpu.vector_store %arg9[%c8, %c0_108], %352 {strides = array<i32>} : memref<12x512xf32, #tpu.memory_space<vmem>>, vector<4x256xf32>,
    %cst_109 = arith.constant 0.000000e+00 : f32
    %354 = vector.broadcast %cst_109 : f32 to vector<4x256xf32>
    %c0_110 = arith.constant 0 : index
    %c754 = arith.constant 754 : index
    %355 = vector.load %arg8[%c0_110, %c754] : memref<4x1280xf32, #tpu.memory_space<vmem>>, vector<4x256xf32>
    %cst_111 = arith.constant 0.000000e+00 : f32
    %356 = vector.shape_cast %20 : vector<1x256xi1> to vector<1x256xi1>
    %357 = vector.broadcast %356 : vector<1x256xi1> to vector<4x256xi1>
    %358 = vector.broadcast %cst_111 : f32 to vector<4x256xf32>
    %359 = arith.select %357, %355, %358 : vector<4x256xi1>, vector<4x256xf32>
    %360 = vector.extract_strided_slice %9 {offsets = [0, 1], sizes = [4, 1], strides = [1, 1]} : vector<4x17xf32> to vector<4x1xf32>
    %361 = vector.broadcast %360 : vector<4x1xf32> to vector<4x256xf32>
    %362 = arith.mulf %359, %361 : vector<4x256xf32>
    %363 = arith.addf %354, %362 : vector<4x256xf32>
    %c0_112 = arith.constant 0 : index
    %c756 = arith.constant 756 : index
    %364 = vector.load %arg8[%c0_112, %c756] : memref<4x1280xf32, #tpu.memory_space<vmem>>, vector<4x256xf32>
    %cst_113 = arith.constant 0.000000e+00 : f32
    %365 = vector.shape_cast %29 : vector<1x256xi1> to vector<1x256xi1>
    %366 = vector.broadcast %365 : vector<1x256xi1> to vector<4x256xi1>
    %367 = vector.broadcast %cst_113 : f32 to vector<4x256xf32>
    %368 = arith.select %366, %364, %367 : vector<4x256xi1>, vector<4x256xf32>
    %369 = vector.extract_strided_slice %9 {offsets = [0, 2], sizes = [4, 1], strides = [1, 1]} : vector<4x17xf32> to vector<4x1xf32>
    %370 = vector.broadcast %369 : vector<4x1xf32> to vector<4x256xf32>
    %371 = arith.mulf %368, %370 : vector<4x256xf32>
    %372 = arith.addf %363, %371 : vector<4x256xf32>
    %c0_114 = arith.constant 0 : index
    %c758 = arith.constant 758 : index
    %373 = vector.load %arg8[%c0_114, %c758] : memref<4x1280xf32, #tpu.memory_space<vmem>>, vector<4x256xf32>
    %cst_115 = arith.constant 0.000000e+00 : f32
    %374 = vector.shape_cast %38 : vector<1x256xi1> to vector<1x256xi1>
    %375 = vector.broadcast %374 : vector<1x256xi1> to vector<4x256xi1>
    %376 = vector.broadcast %cst_115 : f32 to vector<4x256xf32>
    %377 = arith.select %375, %373, %376 : vector<4x256xi1>, vector<4x256xf32>
    %378 = vector.extract_strided_slice %9 {offsets = [0, 3], sizes = [4, 1], strides = [1, 1]} : vector<4x17xf32> to vector<4x1xf32>
    %379 = vector.broadcast %378 : vector<4x1xf32> to vector<4x256xf32>
    %380 = arith.mulf %377, %379 : vector<4x256xf32>
    %381 = arith.addf %372, %380 : vector<4x256xf32>
    %c0_116 = arith.constant 0 : index
    %c760 = arith.constant 760 : index
    %382 = vector.load %arg8[%c0_116, %c760] : memref<4x1280xf32, #tpu.memory_space<vmem>>, vector<4x256xf32>
    %cst_117 = arith.constant 0.000000e+00 : f32
    %383 = vector.shape_cast %47 : vector<1x256xi1> to vector<1x256xi1>
    %384 = vector.broadcast %383 : vector<1x256xi1> to vector<4x256xi1>
    %385 = vector.broadcast %cst_117 : f32 to vector<4x256xf32>
    %386 = arith.select %384, %382, %385 : vector<4x256xi1>, vector<4x256xf32>
    %387 = vector.extract_strided_slice %9 {offsets = [0, 4], sizes = [4, 1], strides = [1, 1]} : vector<4x17xf32> to vector<4x1xf32>
    %388 = vector.broadcast %387 : vector<4x1xf32> to vector<4x256xf32>
    %389 = arith.mulf %386, %388 : vector<4x256xf32>
    %390 = arith.addf %381, %389 : vector<4x256xf32>
    %c0_118 = arith.constant 0 : index
    %c762 = arith.constant 762 : index
    %391 = vector.load %arg8[%c0_118, %c762] : memref<4x1280xf32, #tpu.memory_space<vmem>>, vector<4x256xf32>
    %cst_119 = arith.constant 0.000000e+00 : f32
    %392 = vector.shape_cast %56 : vector<1x256xi1> to vector<1x256xi1>
    %393 = vector.broadcast %392 : vector<1x256xi1> to vector<4x256xi1>
    %394 = vector.broadcast %cst_119 : f32 to vector<4x256xf32>
    %395 = arith.select %393, %391, %394 : vector<4x256xi1>, vector<4x256xf32>
    %396 = vector.extract_strided_slice %9 {offsets = [0, 5], sizes = [4, 1], strides = [1, 1]} : vector<4x17xf32> to vector<4x1xf32>
    %397 = vector.broadcast %396 : vector<4x1xf32> to vector<4x256xf32>
    %398 = arith.mulf %395, %397 : vector<4x256xf32>
    %399 = arith.addf %390, %398 : vector<4x256xf32>
    %c0_120 = arith.constant 0 : index
    %c764 = arith.constant 764 : index
    %400 = vector.load %arg8[%c0_120, %c764] : memref<4x1280xf32, #tpu.memory_space<vmem>>, vector<4x256xf32>
    %cst_121 = arith.constant 0.000000e+00 : f32
    %401 = vector.shape_cast %65 : vector<1x256xi1> to vector<1x256xi1>
    %402 = vector.broadcast %401 : vector<1x256xi1> to vector<4x256xi1>
    %403 = vector.broadcast %cst_121 : f32 to vector<4x256xf32>
    %404 = arith.select %402, %400, %403 : vector<4x256xi1>, vector<4x256xf32>
    %405 = vector.extract_strided_slice %9 {offsets = [0, 6], sizes = [4, 1], strides = [1, 1]} : vector<4x17xf32> to vector<4x1xf32>
    %406 = vector.broadcast %405 : vector<4x1xf32> to vector<4x256xf32>
    %407 = arith.mulf %404, %406 : vector<4x256xf32>
    %408 = arith.addf %399, %407 : vector<4x256xf32>
    %c0_122 = arith.constant 0 : index
    %c766 = arith.constant 766 : index
    %409 = vector.load %arg8[%c0_122, %c766] : memref<4x1280xf32, #tpu.memory_space<vmem>>, vector<4x256xf32>
    %cst_123 = arith.constant 0.000000e+00 : f32
    %410 = vector.shape_cast %74 : vector<1x256xi1> to vector<1x256xi1>
    %411 = vector.broadcast %410 : vector<1x256xi1> to vector<4x256xi1>
    %412 = vector.broadcast %cst_123 : f32 to vector<4x256xf32>
    %413 = arith.select %411, %409, %412 : vector<4x256xi1>, vector<4x256xf32>
    %414 = vector.extract_strided_slice %9 {offsets = [0, 7], sizes = [4, 1], strides = [1, 1]} : vector<4x17xf32> to vector<4x1xf32>
    %415 = vector.broadcast %414 : vector<4x1xf32> to vector<4x256xf32>
    %416 = arith.mulf %413, %415 : vector<4x256xf32>
    %417 = arith.addf %408, %416 : vector<4x256xf32>
    %c0_124 = arith.constant 0 : index
    %c768_125 = arith.constant 768 : index
    %418 = vector.load %arg8[%c0_124, %c768_125] : memref<4x1280xf32, #tpu.memory_space<vmem>>, vector<4x256xf32>
    %419 = vector.extract_strided_slice %9 {offsets = [0, 8], sizes = [4, 1], strides = [1, 1]} : vector<4x17xf32> to vector<4x1xf32>
    %420 = vector.broadcast %419 : vector<4x1xf32> to vector<4x256xf32>
    %421 = arith.mulf %418, %420 : vector<4x256xf32>
    %422 = arith.addf %417, %421 : vector<4x256xf32>
    %c0_126 = arith.constant 0 : index
    %c770 = arith.constant 770 : index
    %423 = vector.load %arg8[%c0_126, %c770] : memref<4x1280xf32, #tpu.memory_space<vmem>>, vector<4x256xf32>
    %cst_127 = arith.constant 0.000000e+00 : f32
    %424 = vector.shape_cast %83 : vector<1x256xi1> to vector<1x256xi1>
    %425 = vector.broadcast %424 : vector<1x256xi1> to vector<4x256xi1>
    %426 = vector.broadcast %cst_127 : f32 to vector<4x256xf32>
    %427 = arith.select %425, %423, %426 : vector<4x256xi1>, vector<4x256xf32>
    %428 = vector.extract_strided_slice %9 {offsets = [0, 9], sizes = [4, 1], strides = [1, 1]} : vector<4x17xf32> to vector<4x1xf32>
    %429 = vector.broadcast %428 : vector<4x1xf32> to vector<4x256xf32>
    %430 = arith.mulf %427, %429 : vector<4x256xf32>
    %431 = arith.addf %422, %430 : vector<4x256xf32>
    %c0_128 = arith.constant 0 : index
    %c772 = arith.constant 772 : index
    %432 = vector.load %arg8[%c0_128, %c772] : memref<4x1280xf32, #tpu.memory_space<vmem>>, vector<4x256xf32>
    %cst_129 = arith.constant 0.000000e+00 : f32
    %433 = vector.shape_cast %92 : vector<1x256xi1> to vector<1x256xi1>
    %434 = vector.broadcast %433 : vector<1x256xi1> to vector<4x256xi1>
    %435 = vector.broadcast %cst_129 : f32 to vector<4x256xf32>
    %436 = arith.select %434, %432, %435 : vector<4x256xi1>, vector<4x256xf32>
    %437 = vector.extract_strided_slice %9 {offsets = [0, 10], sizes = [4, 1], strides = [1, 1]} : vector<4x17xf32> to vector<4x1xf32>
    %438 = vector.broadcast %437 : vector<4x1xf32> to vector<4x256xf32>
    %439 = arith.mulf %436, %438 : vector<4x256xf32>
    %440 = arith.addf %431, %439 : vector<4x256xf32>
    %c0_130 = arith.constant 0 : index
    %c774 = arith.constant 774 : index
    %441 = vector.load %arg8[%c0_130, %c774] : memref<4x1280xf32, #tpu.memory_space<vmem>>, vector<4x256xf32>
    %cst_131 = arith.constant 0.000000e+00 : f32
    %442 = vector.shape_cast %101 : vector<1x256xi1> to vector<1x256xi1>
    %443 = vector.broadcast %442 : vector<1x256xi1> to vector<4x256xi1>
    %444 = vector.broadcast %cst_131 : f32 to vector<4x256xf32>
    %445 = arith.select %443, %441, %444 : vector<4x256xi1>, vector<4x256xf32>
    %446 = vector.extract_strided_slice %9 {offsets = [0, 11], sizes = [4, 1], strides = [1, 1]} : vector<4x17xf32> to vector<4x1xf32>
    %447 = vector.broadcast %446 : vector<4x1xf32> to vector<4x256xf32>
    %448 = arith.mulf %445, %447 : vector<4x256xf32>
    %449 = arith.addf %440, %448 : vector<4x256xf32>
    %c0_132 = arith.constant 0 : index
    %c776 = arith.constant 776 : index
    %450 = vector.load %arg8[%c0_132, %c776] : memref<4x1280xf32, #tpu.memory_space<vmem>>, vector<4x256xf32>
    %cst_133 = arith.constant 0.000000e+00 : f32
    %451 = vector.shape_cast %110 : vector<1x256xi1> to vector<1x256xi1>
    %452 = vector.broadcast %451 : vector<1x256xi1> to vector<4x256xi1>
    %453 = vector.broadcast %cst_133 : f32 to vector<4x256xf32>
    %454 = arith.select %452, %450, %453 : vector<4x256xi1>, vector<4x256xf32>
    %455 = vector.extract_strided_slice %9 {offsets = [0, 12], sizes = [4, 1], strides = [1, 1]} : vector<4x17xf32> to vector<4x1xf32>
    %456 = vector.broadcast %455 : vector<4x1xf32> to vector<4x256xf32>
    %457 = arith.mulf %454, %456 : vector<4x256xf32>
    %458 = arith.addf %449, %457 : vector<4x256xf32>
    %c0_134 = arith.constant 0 : index
    %c778 = arith.constant 778 : index
    %459 = vector.load %arg8[%c0_134, %c778] : memref<4x1280xf32, #tpu.memory_space<vmem>>, vector<4x256xf32>
    %cst_135 = arith.constant 0.000000e+00 : f32
    %460 = vector.shape_cast %119 : vector<1x256xi1> to vector<1x256xi1>
    %461 = vector.broadcast %460 : vector<1x256xi1> to vector<4x256xi1>
    %462 = vector.broadcast %cst_135 : f32 to vector<4x256xf32>
    %463 = arith.select %461, %459, %462 : vector<4x256xi1>, vector<4x256xf32>
    %464 = vector.extract_strided_slice %9 {offsets = [0, 13], sizes = [4, 1], strides = [1, 1]} : vector<4x17xf32> to vector<4x1xf32>
    %465 = vector.broadcast %464 : vector<4x1xf32> to vector<4x256xf32>
    %466 = arith.mulf %463, %465 : vector<4x256xf32>
    %467 = arith.addf %458, %466 : vector<4x256xf32>
    %c0_136 = arith.constant 0 : index
    %c780 = arith.constant 780 : index
    %468 = vector.load %arg8[%c0_136, %c780] : memref<4x1280xf32, #tpu.memory_space<vmem>>, vector<4x256xf32>
    %cst_137 = arith.constant 0.000000e+00 : f32
    %469 = vector.shape_cast %128 : vector<1x256xi1> to vector<1x256xi1>
    %470 = vector.broadcast %469 : vector<1x256xi1> to vector<4x256xi1>
    %471 = vector.broadcast %cst_137 : f32 to vector<4x256xf32>
    %472 = arith.select %470, %468, %471 : vector<4x256xi1>, vector<4x256xf32>
    %473 = vector.extract_strided_slice %9 {offsets = [0, 14], sizes = [4, 1], strides = [1, 1]} : vector<4x17xf32> to vector<4x1xf32>
    %474 = vector.broadcast %473 : vector<4x1xf32> to vector<4x256xf32>
    %475 = arith.mulf %472, %474 : vector<4x256xf32>
    %476 = arith.addf %467, %475 : vector<4x256xf32>
    %c0_138 = arith.constant 0 : index
    %c782 = arith.constant 782 : index
    %477 = vector.load %arg8[%c0_138, %c782] : memref<4x1280xf32, #tpu.memory_space<vmem>>, vector<4x256xf32>
    %cst_139 = arith.constant 0.000000e+00 : f32
    %478 = vector.shape_cast %137 : vector<1x256xi1> to vector<1x256xi1>
    %479 = vector.broadcast %478 : vector<1x256xi1> to vector<4x256xi1>
    %480 = vector.broadcast %cst_139 : f32 to vector<4x256xf32>
    %481 = arith.select %479, %477, %480 : vector<4x256xi1>, vector<4x256xf32>
    %482 = vector.extract_strided_slice %9 {offsets = [0, 15], sizes = [4, 1], strides = [1, 1]} : vector<4x17xf32> to vector<4x1xf32>
    %483 = vector.broadcast %482 : vector<4x1xf32> to vector<4x256xf32>
    %484 = arith.mulf %481, %483 : vector<4x256xf32>
    %485 = arith.addf %476, %484 : vector<4x256xf32>
    %cst_140 = arith.constant 0.000000e+00 : f32
    %486 = vector.broadcast %cst_140 : f32 to vector<4x256xf32>
    %487 = arith.maximumf %485, %486 : vector<4x256xf32>
    %c0_141 = arith.constant 0 : index
    %c256_142 = arith.constant 256 : index
    %488 = vector.load %arg9[%c0_141, %c256_142] : memref<12x512xf32, #tpu.memory_space<vmem>>, vector<4x256xf32>
    tpu.vector_store %arg9[%c0_141, %c256_142], %487 {strides = array<i32>} : memref<12x512xf32, #tpu.memory_space<vmem>>, vector<4x256xf32>,
    %cst_143 = arith.constant 0.000000e+00 : f32
    %489 = vector.broadcast %cst_143 : f32 to vector<4x256xf32>
    %c0_144 = arith.constant 0 : index
    %c544 = arith.constant 544 : index
    %490 = vector.load %arg8[%c0_144, %c544] : memref<4x1280xf32, #tpu.memory_space<vmem>>, vector<4x256xf32>
    %491 = vector.extract_strided_slice %10 {offsets = [0, 1], sizes = [4, 1], strides = [1, 1]} : vector<4x17xf32> to vector<4x1xf32>
    %492 = vector.broadcast %491 : vector<4x1xf32> to vector<4x256xf32>
    %493 = arith.mulf %490, %492 : vector<4x256xf32>
    %494 = arith.addf %489, %493 : vector<4x256xf32>
    %c0_145 = arith.constant 0 : index
    %c576 = arith.constant 576 : index
    %495 = vector.load %arg8[%c0_145, %c576] : memref<4x1280xf32, #tpu.memory_space<vmem>>, vector<4x256xf32>
    %496 = vector.extract_strided_slice %10 {offsets = [0, 2], sizes = [4, 1], strides = [1, 1]} : vector<4x17xf32> to vector<4x1xf32>
    %497 = vector.broadcast %496 : vector<4x1xf32> to vector<4x256xf32>
    %498 = arith.mulf %495, %497 : vector<4x256xf32>
    %499 = arith.addf %494, %498 : vector<4x256xf32>
    %c0_146 = arith.constant 0 : index
    %c608 = arith.constant 608 : index
    %500 = vector.load %arg8[%c0_146, %c608] : memref<4x1280xf32, #tpu.memory_space<vmem>>, vector<4x256xf32>
    %501 = vector.extract_strided_slice %10 {offsets = [0, 3], sizes = [4, 1], strides = [1, 1]} : vector<4x17xf32> to vector<4x1xf32>
    %502 = vector.broadcast %501 : vector<4x1xf32> to vector<4x256xf32>
    %503 = arith.mulf %500, %502 : vector<4x256xf32>
    %504 = arith.addf %499, %503 : vector<4x256xf32>
    %c0_147 = arith.constant 0 : index
    %c640 = arith.constant 640 : index
    %505 = vector.load %arg8[%c0_147, %c640] : memref<4x1280xf32, #tpu.memory_space<vmem>>, vector<4x256xf32>
    %506 = vector.extract_strided_slice %10 {offsets = [0, 4], sizes = [4, 1], strides = [1, 1]} : vector<4x17xf32> to vector<4x1xf32>
    %507 = vector.broadcast %506 : vector<4x1xf32> to vector<4x256xf32>
    %508 = arith.mulf %505, %507 : vector<4x256xf32>
    %509 = arith.addf %504, %508 : vector<4x256xf32>
    %c0_148 = arith.constant 0 : index
    %c672 = arith.constant 672 : index
    %510 = vector.load %arg8[%c0_148, %c672] : memref<4x1280xf32, #tpu.memory_space<vmem>>, vector<4x256xf32>
    %511 = vector.extract_strided_slice %10 {offsets = [0, 5], sizes = [4, 1], strides = [1, 1]} : vector<4x17xf32> to vector<4x1xf32>
    %512 = vector.broadcast %511 : vector<4x1xf32> to vector<4x256xf32>
    %513 = arith.mulf %510, %512 : vector<4x256xf32>
    %514 = arith.addf %509, %513 : vector<4x256xf32>
    %c0_149 = arith.constant 0 : index
    %c704 = arith.constant 704 : index
    %515 = vector.load %arg8[%c0_149, %c704] : memref<4x1280xf32, #tpu.memory_space<vmem>>, vector<4x256xf32>
    %516 = vector.extract_strided_slice %10 {offsets = [0, 6], sizes = [4, 1], strides = [1, 1]} : vector<4x17xf32> to vector<4x1xf32>
    %517 = vector.broadcast %516 : vector<4x1xf32> to vector<4x256xf32>
    %518 = arith.mulf %515, %517 : vector<4x256xf32>
    %519 = arith.addf %514, %518 : vector<4x256xf32>
    %c0_150 = arith.constant 0 : index
    %c736 = arith.constant 736 : index
    %520 = vector.load %arg8[%c0_150, %c736] : memref<4x1280xf32, #tpu.memory_space<vmem>>, vector<4x256xf32>
    %521 = vector.extract_strided_slice %10 {offsets = [0, 7], sizes = [4, 1], strides = [1, 1]} : vector<4x17xf32> to vector<4x1xf32>
    %522 = vector.broadcast %521 : vector<4x1xf32> to vector<4x256xf32>
    %523 = arith.mulf %520, %522 : vector<4x256xf32>
    %524 = arith.addf %519, %523 : vector<4x256xf32>
    %c0_151 = arith.constant 0 : index
    %c768_152 = arith.constant 768 : index
    %525 = vector.load %arg8[%c0_151, %c768_152] : memref<4x1280xf32, #tpu.memory_space<vmem>>, vector<4x256xf32>
    %526 = vector.extract_strided_slice %10 {offsets = [0, 8], sizes = [4, 1], strides = [1, 1]} : vector<4x17xf32> to vector<4x1xf32>
    %527 = vector.broadcast %526 : vector<4x1xf32> to vector<4x256xf32>
    %528 = arith.mulf %525, %527 : vector<4x256xf32>
    %529 = arith.addf %524, %528 : vector<4x256xf32>
    %c0_153 = arith.constant 0 : index
    %c800 = arith.constant 800 : index
    %530 = vector.load %arg8[%c0_153, %c800] : memref<4x1280xf32, #tpu.memory_space<vmem>>, vector<4x256xf32>
    %531 = vector.extract_strided_slice %10 {offsets = [0, 9], sizes = [4, 1], strides = [1, 1]} : vector<4x17xf32> to vector<4x1xf32>
    %532 = vector.broadcast %531 : vector<4x1xf32> to vector<4x256xf32>
    %533 = arith.mulf %530, %532 : vector<4x256xf32>
    %534 = arith.addf %529, %533 : vector<4x256xf32>
    %c0_154 = arith.constant 0 : index
    %c832 = arith.constant 832 : index
    %535 = vector.load %arg8[%c0_154, %c832] : memref<4x1280xf32, #tpu.memory_space<vmem>>, vector<4x256xf32>
    %536 = vector.extract_strided_slice %10 {offsets = [0, 10], sizes = [4, 1], strides = [1, 1]} : vector<4x17xf32> to vector<4x1xf32>
    %537 = vector.broadcast %536 : vector<4x1xf32> to vector<4x256xf32>
    %538 = arith.mulf %535, %537 : vector<4x256xf32>
    %539 = arith.addf %534, %538 : vector<4x256xf32>
    %c0_155 = arith.constant 0 : index
    %c864 = arith.constant 864 : index
    %540 = vector.load %arg8[%c0_155, %c864] : memref<4x1280xf32, #tpu.memory_space<vmem>>, vector<4x256xf32>
    %541 = vector.extract_strided_slice %10 {offsets = [0, 11], sizes = [4, 1], strides = [1, 1]} : vector<4x17xf32> to vector<4x1xf32>
    %542 = vector.broadcast %541 : vector<4x1xf32> to vector<4x256xf32>
    %543 = arith.mulf %540, %542 : vector<4x256xf32>
    %544 = arith.addf %539, %543 : vector<4x256xf32>
    %c0_156 = arith.constant 0 : index
    %c896 = arith.constant 896 : index
    %545 = vector.load %arg8[%c0_156, %c896] : memref<4x1280xf32, #tpu.memory_space<vmem>>, vector<4x256xf32>
    %546 = vector.extract_strided_slice %10 {offsets = [0, 12], sizes = [4, 1], strides = [1, 1]} : vector<4x17xf32> to vector<4x1xf32>
    %547 = vector.broadcast %546 : vector<4x1xf32> to vector<4x256xf32>
    %548 = arith.mulf %545, %547 : vector<4x256xf32>
    %549 = arith.addf %544, %548 : vector<4x256xf32>
    %c0_157 = arith.constant 0 : index
    %c928 = arith.constant 928 : index
    %550 = vector.load %arg8[%c0_157, %c928] : memref<4x1280xf32, #tpu.memory_space<vmem>>, vector<4x256xf32>
    %551 = vector.extract_strided_slice %10 {offsets = [0, 13], sizes = [4, 1], strides = [1, 1]} : vector<4x17xf32> to vector<4x1xf32>
    %552 = vector.broadcast %551 : vector<4x1xf32> to vector<4x256xf32>
    %553 = arith.mulf %550, %552 : vector<4x256xf32>
    %554 = arith.addf %549, %553 : vector<4x256xf32>
    %c0_158 = arith.constant 0 : index
    %c960 = arith.constant 960 : index
    %555 = vector.load %arg8[%c0_158, %c960] : memref<4x1280xf32, #tpu.memory_space<vmem>>, vector<4x256xf32>
    %556 = vector.extract_strided_slice %10 {offsets = [0, 14], sizes = [4, 1], strides = [1, 1]} : vector<4x17xf32> to vector<4x1xf32>
    %557 = vector.broadcast %556 : vector<4x1xf32> to vector<4x256xf32>
    %558 = arith.mulf %555, %557 : vector<4x256xf32>
    %559 = arith.addf %554, %558 : vector<4x256xf32>
    %c0_159 = arith.constant 0 : index
    %c992 = arith.constant 992 : index
    %560 = vector.load %arg8[%c0_159, %c992] : memref<4x1280xf32, #tpu.memory_space<vmem>>, vector<4x256xf32>
    %561 = vector.extract_strided_slice %10 {offsets = [0, 15], sizes = [4, 1], strides = [1, 1]} : vector<4x17xf32> to vector<4x1xf32>
    %562 = vector.broadcast %561 : vector<4x1xf32> to vector<4x256xf32>
    %563 = arith.mulf %560, %562 : vector<4x256xf32>
    %564 = arith.addf %559, %563 : vector<4x256xf32>
    %cst_160 = arith.constant 0.000000e+00 : f32
    %565 = vector.broadcast %cst_160 : f32 to vector<4x256xf32>
    %566 = arith.maximumf %564, %565 : vector<4x256xf32>
    %c4_161 = arith.constant 4 : index
    %c256_162 = arith.constant 256 : index
    %567 = vector.load %arg9[%c4_161, %c256_162] : memref<12x512xf32, #tpu.memory_space<vmem>>, vector<4x256xf32>
    tpu.vector_store %arg9[%c4_161, %c256_162], %566 {strides = array<i32>} : memref<12x512xf32, #tpu.memory_space<vmem>>, vector<4x256xf32>,
    %c0_163 = arith.constant 0 : index
    %c768_164 = arith.constant 768 : index
    %568 = vector.load %arg8[%c0_163, %c768_164] : memref<4x1280xf32, #tpu.memory_space<vmem>>, vector<4x256xf32>
    %c8_165 = arith.constant 8 : index
    %c256_166 = arith.constant 256 : index
    %569 = vector.load %arg9[%c8_165, %c256_166] : memref<12x512xf32, #tpu.memory_space<vmem>>, vector<4x256xf32>
    tpu.vector_store %arg9[%c8_165, %c256_166], %568 {strides = array<i32>} : memref<12x512xf32, #tpu.memory_space<vmem>>, vector<4x256xf32>,
    %c0_167 = arith.constant 0 : index
    %c0_168 = arith.constant 0 : index
    %570 = vector.load %arg4[%c0_167, %c0_168] : memref<4x12xf32, #tpu.memory_space<vmem>>, vector<4x12xf32>
    %c0_169 = arith.constant 0 : index
    %c0_170 = arith.constant 0 : index
    %571 = vector.load %arg9[%c0_169, %c0_170] : memref<12x512xf32, #tpu.memory_space<vmem>>, vector<12x512xf32>
    %cst_171 = arith.constant dense<0.000000e+00> : vector<4x512xf32>
    %572 = tpu.matmul %570, %571, %cst_171 {dimension_numbers = #tpu.dot_dimension_numbers<[1], [0], [0], [1], [0, 0, 1, 1], [], []>} : vector<4x12xf32>, vector<12x512xf32>, vector<4x512xf32> -> vector<4x512xf32>
    %c0_172 = arith.constant 0 : index
    %c0_173 = arith.constant 0 : index
    %573 = vector.load %arg5[%c0_172, %c0_173] : memref<4x1xf32, #tpu.memory_space<vmem>>, vector<4x1xf32>
    %574 = vector.broadcast %573 : vector<4x1xf32> to vector<4x512xf32>
    %575 = arith.addf %572, %574 : vector<4x512xf32>
    %576 = vector.extract_strided_slice %575 {offsets = [0, 0], sizes = [4, 256], strides = [1, 1]} : vector<4x512xf32> to vector<4x256xf32>
    %c0_174 = arith.constant 0 : index
    %c0_175 = arith.constant 0 : index
    %c0_176 = arith.constant 0 : index
    %577 = vector.load %arg7[%c0_174, %c0_175, %c0_176] : memref<2x4x256xf32, #tpu.memory_space<vmem>>, vector<1x4x256xf32>
    %578 = vector.shape_cast %577 : vector<1x4x256xf32> to vector<4x256xf32>
    %579 = vector.shape_cast %576 : vector<4x256xf32> to vector<1x4x256xf32>
    tpu.vector_store %arg7[%c0_174, %c0_175, %c0_176], %579 {strides = array<i32>} : memref<2x4x256xf32, #tpu.memory_space<vmem>>, vector<1x4x256xf32>,
    %580 = vector.extract_strided_slice %575 {offsets = [0, 256], sizes = [4, 256], strides = [1, 1]} : vector<4x512xf32> to vector<4x256xf32>
    %c1_177 = arith.constant 1 : index
    %c0_178 = arith.constant 0 : index
    %c0_179 = arith.constant 0 : index
    %581 = vector.load %arg7[%c1_177, %c0_178, %c0_179] : memref<2x4x256xf32, #tpu.memory_space<vmem>>, vector<1x4x256xf32>
    %582 = vector.shape_cast %581 : vector<1x4x256xf32> to vector<4x256xf32>
    %583 = vector.shape_cast %580 : vector<4x256xf32> to vector<1x4x256xf32>
    tpu.vector_store %arg7[%c1_177, %c0_178, %c0_179], %583 {strides = array<i32>} : memref<2x4x256xf32, #tpu.memory_space<vmem>>, vector<1x4x256xf32>,
    return
  }
  func.func @transform_0(%arg0: i32) -> (i32, i32, i32) {
    %c0_i32 = arith.constant 0 : i32
    %c0_i32_0 = arith.constant 0 : i32
    %c0_i32_1 = arith.constant 0 : i32
    return %arg0, %c0_i32, %c0_i32_0 : i32, i32, i32
  }
  func.func @transform_1(%arg0: i32) -> (i32, i32) {
    %c0_i32 = arith.constant 0 : i32
    %c0_i32_0 = arith.constant 0 : i32
    %c0_i32_1 = arith.constant 0 : i32
    return %c0_i32, %c0_i32_0 : i32, i32
  }
  func.func @transform_2(%arg0: i32) -> (i32, i32) {
    %c0_i32 = arith.constant 0 : i32
    %c0_i32_0 = arith.constant 0 : i32
    %c0_i32_1 = arith.constant 0 : i32
    return %c0_i32, %c0_i32_0 : i32, i32
  }
  func.func @transform_3(%arg0: i32) -> (i32, i32) {
    %c0_i32 = arith.constant 0 : i32
    %c0_i32_0 = arith.constant 0 : i32
    %c0_i32_1 = arith.constant 0 : i32
    return %c0_i32, %c0_i32_0 : i32, i32
  }
  func.func @transform_4(%arg0: i32) -> (i32, i32) {
    %c0_i32 = arith.constant 0 : i32
    %c0_i32_0 = arith.constant 0 : i32
    %c0_i32_1 = arith.constant 0 : i32
    return %c0_i32, %c0_i32_0 : i32, i32
  }
  func.func @transform_5(%arg0: i32) -> (i32, i32) {
    %c0_i32 = arith.constant 0 : i32
    %c0_i32_0 = arith.constant 0 : i32
    %c0_i32_1 = arith.constant 0 : i32
    return %c0_i32, %c0_i32_0 : i32, i32
  }
  func.func @transform_6(%arg0: i32) -> (i32, i32, i32) {
    %c0_i32 = arith.constant 0 : i32
    %c0_i32_0 = arith.constant 0 : i32
    %c0_i32_1 = arith.constant 0 : i32
    return %arg0, %c0_i32, %c0_i32_0 : i32, i32, i32
  }
}

</mosaic_0001>

<bundles_post_ra>
// kernel: big_conv_block.1
= control target key start
LH: loop header
LB: loop body
LE: loop exit
PB: predicated region body
PF: predicated region fallthrough
CT: control target
= control target key end

     0   :  { %v1782_v0 = vmov 2   ;;  %v1783_v2 = vmov 4   ;;  %v1784_v5 = vmov 0.0   ;;  %v1785_v6 = vmov 3   ;;  %s1797_s27 = smov 12   ;;  %s1799_s28 = smov 14   ;;  %s3068_s2 = inlined_call_operand.vmem [shape: f32[4,17], index: 2, kind: input, shape index: {}]   ;;  %s3069_s0 = inlined_call_operand.vmem [shape: f32[2,4,256], index: 0, kind: input, shape index: {}]   ;;  %s3070_s1 = inlined_call_operand.vmem [shape: f32[4,17], index: 1, kind: input, shape index: {}]   ;;  %s3071_s5 = inlined_call_operand.vmem [shape: s32[1,256], index: 5, kind: input, shape index: {}]   ;;  %s3072_s4 = inlined_call_operand.vmem [shape: f32[4,1], index: 4, kind: input, shape index: {}]   ;;  %s3073_s3 = inlined_call_operand.vmem [shape: f32[4,12], index: 3, kind: input, shape index: {}]   ;;  %s3074_s6 = inlined_call_operand.vmem [shape: f32[2,4,256], index: 6, kind: output, shape index: {}]  }
   0x1   :  { %1708 = vset.pattern.permute.xlu0 %v1782_v0  ;;  %v36_v1 = vld [vmem:[%s3068_s2] sm:$0xf]  ;;  %1710 = vset.pattern.permute.xlu1 %v1783_v2  ;;  %v1865_v4 = vld [vmem:[%s3069_s0 + $0x8] sm:$0xff]  ;;  %27 = vst [vmem:[#allocation2] sm:$0xff] %v1784_v5  ;;  %28 = vst [vmem:[#allocation2 + $0x10] sm:$0xff] %v1784_v5  ;;  %v1786_v7 = vmov 6   ;;  %v97_v24 = vlaneseq }
   0x2   :  { %654 = vperm.xlu0 %1708, %v36_v1   ;;  %712 = vperm.xlu1 %1710, %v36_v1   ;;  %v1860_v3 = vld [vmem:[%s3069_s0] sm:$0xff]  ;;  %29 = vst [vmem:[#allocation2 + $0x20] sm:$0xff] %v1784_v5  ;;  %34 = vst [vmem:[#allocation2 + $0x18] sm:$0xff] %v1865_v4  ;;  %v1787_v8 = vmov 7   ;;  %v1788_v9 = vmov 8   ;;  %v1789_v10 = vmov 10  }
   0x3   :  { %31 = vst [vmem:[#allocation2 + $0x8] sm:$0xff] %v1860_v3  ;;  %1559 = vmatprep.mubr.f32.mxu0 %v1784_v5  ;;  %1630 = vmatprep.mubr.f32.mxu1 %v1784_v5  ;;  %v1790_v11 = vmov 12   ;;  %v1791_v12 = vmov 11   ;;  %v3079_v13 = vmov 13   ;;  %v3076_v14 = vmov 14   ;;  %s1801_s29 = smov 96  }
   0x4   :  { %v1794_v15 = vmov 1   ;;  %v1879_v16 = vld [vmem:[%s3070_s1] sm:$0xf]  ;;  %v3075_v17 = vmov 15   ;;  %v1796_v19 = vmov 5   ;;  %v1798_v21 = vmov 9  }
   0x5   :  { %v1800_v25 = vmov 839922192   ;;  %v1900_v27 = vshrl.u32 %v97_v24, 7  ;;  %s1802_s30 = smov 64   ;;  %s1803_s7 = smov 32   ;;  %vm674_vm0 = vcmask 1043456  }
   0x6   :  { %1709 = vset.pattern.permute.xlu0 %v1785_v6  ;;  %1711 = vset.pattern.permute.xlu1 %v1786_v7  ;;  %v359_v26 = vunpack.c.l.s4 %v1800_v25  ;;  %s1804_s8 = smov 10   ;;  %s1805_s9 = smov 8   ;;  %vm676_vm1 = vcmask 785408   ;;  %vm704_vm6 = vcmask 523264   ;;  %vm727_vm8 = vcmask 261120  }
   0x7   :  { %683 = vperm.xlu0 %1709, %v36_v1   ;;  %751 = vperm.xlu1 %1711, %v36_v1   ;;  %s1806_s10 = smov 6   ;;  %s1807_s11 = smov 4   ;;  %vm116_vm10 = vcmask 113664   ;;  %vm154_vm12 = vcmask 97280  }
   0x8   :  { %v360_v28 = vunpack.c.0.s8 %v359_v26  ;;  %s1808_s12 = smov 2   ;;  %s1809_s13 = smov 126  }
   0x9   :  { %v1909_v35 = vld [vmem:[#allocation2 + $0x18] sm:$0xf]  ;;  %v1935_v53 = vld [vmem:[#allocation2 + $0x1c] sm:$0xf]  ;;  %v1967_v25 = vld [vmem:[#allocation2 + $0x20] sm:$0xf] }
   0xa   :  { %v1883_v18 = vld [vmem:[#allocation2 + $0x4] sm:$0xff]  ;;  %v95_v22 = vld [vmem:[#allocation2 + $0xc] sm:$0xf]  ;;  %v1903_v29 = vsub.s32 %v360_v28, %v1900_v27  ;;  %v1921_v43 = vld [vmem:[#allocation2 + $0x14] sm:$0xff]  ;;  %s1810_s14 = smov 124   ;;  %s1812_s17 = smov 122  }
   0xb   :  { %1712 = vset.pattern.permute.xlu1 %v1787_v8  ;;  %1713 = vset.pattern.permute.xlu0 %v1788_v9  ;;  %v1888_v20 = vcombine.high %v1883_v18, %v1883_v18  ;;  %v133_v23 = vld [vmem:[#allocation2 + $0xc] sm:$0xf]  ;;  %v1905_v31 = vld [vmem:[#allocation2 + $0x8] sm:$0xf]  ;;  %s1813_s18 = smov 120   ;;  %s1814_s19 = smov 118  }
   0xc   :  { %778 = vperm.xlu1 %1712, %v36_v1   ;;  %806 = vperm.xlu0 %1713, %v36_v1   ;;  %3098 = vst [vmem:[#allocation4_spill] sm:$0xff] %v1903_v29  ;;  %v1929_v49 = vld [vmem:[#allocation2 + $0xc] sm:$0xf]  ;;  %s1815_s20 = smov 116   ;;  %s1816_s21 = smov 114  }
  0x10   :  { %1714 = vset.pattern.permute.xlu1 %v1789_v10  ;;  %1716 = vset.pattern.permute.xlu0 %v1790_v11 }
  0x11   :  { %844 = vperm.xlu1 %1714, %v36_v1   ;;  %899 = vperm.xlu0 %1716, %v36_v1  }
  0x15   :  { %1715 = vset.pattern.permute.xlu1 %v1791_v12  ;;  %1721 = vset.pattern.permute.xlu0 %v3079_v13 }
  0x16   :  { %871 = vperm.xlu1 %1715, %v36_v1   ;;  %922 = vperm.xlu0 %1721, %v36_v1  }
  0x1a   :  { %1717 = vset.pattern.permute.xlu1 %v3076_v14  ;;  %1722 = vset.pattern.permute.xlu0 %v1794_v15 }
  0x1b   :  { %937 = vperm.xlu1 %1717, %v36_v1   ;;  %639 = vperm.xlu0 %1722, %v36_v1  }
  0x1f   :  { %1718 = vset.pattern.permute.xlu1 %v3075_v17  ;;  %125 = vperm.xlu0 %1722, %v1879_v16  }
  0x20   :  { %964 = vperm.xlu1 %1718, %v36_v1  }
  0x23   :  { %1725 = vset.pattern.permute.xlu0 %v1783_v2 }
  0x24   :  { %1719 = vset.pattern.permute.xlu1 %v1796_v19  ;;  %236 = vperm.xlu0 %1725, %v1879_v16  }
  0x25   :  { %736 = vperm.xlu1 %1719, %v36_v1  }
  0x28   :  { %150 = vrot.lane.b32.xlu0 %v1888_v20, %s1797_s27 }
  0x29   :  { %1720 = vset.pattern.permute.xlu1 %v1798_v21  ;;  %1726 = vset.pattern.permute.xlu0 %v1796_v19  ;;  %v1961_v19 = vld [vmem:[#allocation2 + $0x10] sm:$0xf] }
  0x2a   :  { %829 = vperm.xlu1 %1720, %v36_v1  }
  0x2e   :  { %1723 = vset.pattern.permute.xlu1 %v1782_v0 }
  0x2f   :  { %162 = vperm.xlu1 %1723, %v1879_v16  }
  0x33   :  { %1724 = vset.pattern.permute.xlu1 %v1785_v6 }
  0x34   :  { %199 = vperm.xlu1 %1724, %v1879_v16  }
  0x38   :  { %112 = vrot.lane.b32.xlu1 %v1888_v20, %s1799_s28 }
  0x39   :  { %1727 = vset.pattern.permute.xlu1 %v1786_v7 }
  0x3c   :  { %114 = vrot.lane.b32.xlu1 %v95_v22, %s1799_s28 }
  0x40   :  { %152 = vrot.lane.b32.xlu1 %v133_v23, %s1797_s27 }
  0x81   :  { %v655_v30 = vpop.permute.xlu0 %654  ;;  %v713_v39 = vpop.permute.xlu1 %712 }
  0x82   :  { %v662_v32 = vrot.slane %v655_v30, %v1903_v29  ;;  %v720_v42 = vrot.slane %v713_v39, %v1903_v29  ;;  %v1973_v30 = vld [vmem:[#allocation2 + $0xc] sm:$0xff]  ;;  %v1984_v39 = vld [vmem:[#allocation2 + $0x1c] sm:$0xff] }
  0x83   :  { %3099 = vst [vmem:[#allocation5_spill] sm:$0xff] %v1973_v30  ;;  %3100 = vst [vmem:[#allocation6_spill] sm:$0xff] %v1984_v39 }
  0x84   :  { %v665_v33 = vmul.f32 %v662_v32, %v1905_v31  ;;  %v664_v34 = vmul.f32 0.0, %v662_v32  ;;  %v1265_v38 = vmul.f32 %v1909_v35, %v662_v32  ;;  %v722_v46 = vmul.f32 %v720_v42, %v1883_v18 }
  0x85   :  { %v1297_v47 = vmul.f32 %v1921_v43, %v720_v42 }
  0x86   :  { %670 = vrot.lane.b32.xlu0 %v665_v33, %s1801_s29  ;;  %668 = vrot.lane.b32.xlu1 %v664_v34, %s1801_s29  ;;  %v684_v36 = vpop.permute.xlu0 %683  ;;  %v752_v44 = vpop.permute.xlu1 %751 }
  0x87   :  { %v691_v37 = vrot.slane %v684_v36, %v1903_v29  ;;  %v759_v48 = vrot.slane %v752_v44, %v1903_v29 }
  0x89   :  { %v694_v40 = vmul.f32 %v691_v37, %v1905_v31  ;;  %v693_v41 = vmul.f32 0.0, %v691_v37  ;;  %v1281_v45 = vmul.f32 %v1909_v35, %v691_v37  ;;  %v761_v50 = vmul.f32 %v759_v48, %v1883_v18 }
  0x8a   :  { %1270 = vrot.lane.b32.xlu0 %v1265_v38, %s1801_s29  ;;  %1268 = vrot.lane.b32.xlu1 %v664_v34, %s1801_s29  ;;  %v762_v51 = vmul.f32 %v759_v48, %v1929_v49  ;;  %v1312_v55 = vmul.f32 %v1921_v43, %v759_v48  ;;  %v1313_v56 = vmul.f32 %v1935_v53, %v759_v48 }
  0x8b   :  { %v779_v52 = vpop.permute.xlu1 %778  ;;  %v807_v59 = vpop.permute.xlu0 %806 }
  0x8c   :  { %v786_v54 = vrot.slane %v779_v52, %v1903_v29  ;;  %v814_v61 = vrot.slane %v807_v59, %v1903_v29  ;;  %v2022_v59 = vld [vmem:[#allocation2 + $0x1c] sm:$0xf] }
  0x8e   :  { %699 = vrot.lane.b32.xlu0 %v694_v40, %s1802_s30  ;;  %697 = vrot.lane.b32.xlu1 %v693_v41, %s1802_s30  ;;  %v788_v57 = vmul.f32 %v786_v54, %v1883_v18  ;;  %v789_v58 = vmul.f32 %v786_v54, %v1929_v49  ;;  %v1328_v62 = vmul.f32 %v1921_v43, %v786_v54 }
  0x8f   :  { %v1329_v63 = vmul.f32 %v1935_v53, %v786_v54  ;;  %v816_v0 = vmul.f32 %v814_v61, %v1860_v3  ;;  %v1345_v1 = vmul.f32 %v1865_v4, %v814_v61  ;;  %v2008_v54 = vcombine.high %v1921_v43, %v1921_v43 }
  0x90   :  { %v845_v60 = vpop.permute.xlu1 %844  ;;  %v900_v23 = vpop.permute.xlu0 %899 }
  0x91   :  { %v852_v2 = vrot.slane %v845_v60, %v1903_v29  ;;  %v907_v26 = vrot.slane %v900_v23, %v1903_v29 }
  0x92   :  { %1286 = vrot.lane.b32.xlu0 %v1281_v45, %s1802_s30  ;;  %1284 = vrot.lane.b32.xlu1 %v693_v41, %s1802_s30 }
  0x93   :  { %v1360_v7 = vmul.f32 %v1865_v4, %v852_v2  ;;  %v854_v15 = vmul.f32 %v852_v2, %v1860_v3  ;;  %v855_v24 = vmul.f32 %v852_v2, %v1961_v19  ;;  %v1361_v33 = vmul.f32 %v1967_v25, %v852_v2  ;;  %v170_v2 = vld [vmem:[#allocation2 + $0xc] sm:$0xf] }
  0x94   :  { %v909_v34 = vmul.f32 %v907_v26, %v1973_v30  ;;  %v1393_v42 = vmul.f32 %v1984_v39, %v907_v26 }
  0x95   :  { %v872_v5 = vpop.permute.xlu1 %871 }
  0x96   :  { %1299 = vrot.lane.b32.xlu0 %v1297_v47, %s1803_s7  ;;  %724 = vrot.lane.b32.xlu1 %v722_v46, %s1803_s7  ;;  %v879_v6 = vrot.slane %v872_v5, %v1903_v29  ;;  %v1992_v46 = vld [vmem:[#allocation2 + $0x14] sm:$0xf] }
  0x98   :  { %v881_v22 = vmul.f32 %v879_v6, %v1860_v3  ;;  %v1376_v28 = vmul.f32 %v1865_v4, %v879_v6  ;;  %v882_v37 = vmul.f32 %v879_v6, %v1961_v19  ;;  %v1377_v41 = vmul.f32 %v1967_v25, %v879_v6 }
  0x9a   :  { %765 = vrot.lane.b32.xlu0 %v761_v50, %s1801_s29  ;;  %767 = vrot.lane.b32.xlu1 %v762_v51, %s1801_s29  ;;  %v938_v32 = vpop.permute.xlu1 %937  ;;  %v1998_v50 = vld [vmem:[#allocation2 + $0x24] sm:$0xf] }
  0x9b   :  { %v945_v36 = vrot.slane %v938_v32, %v1903_v29 }
  0x9d   :  { %v947_v38 = vmul.f32 %v945_v36, %v1973_v30  ;;  %v1409_v45 = vmul.f32 %v1984_v39, %v945_v36  ;;  %v948_v48 = vmul.f32 %v945_v36, %v1992_v46  ;;  %v1410_v52 = vmul.f32 %v1998_v50, %v945_v36 }
  0x9e   :  { %1316 = vrot.lane.b32.xlu0 %v1312_v55, %s1801_s29  ;;  %1318 = vrot.lane.b32.xlu1 %v1313_v56, %s1801_s29 }
  0x9f   :  { %v965_v40 = vpop.permute.xlu1 %964 }
  0xa0   :  { %v972_v44 = vrot.slane %v965_v40, %v1903_v29 }
  0xa2   :  { %792 = vrot.lane.b32.xlu0 %v788_v57, %s1802_s30  ;;  %794 = vrot.lane.b32.xlu1 %v789_v58, %s1802_s30  ;;  %v974_v47 = vmul.f32 %v972_v44, %v1973_v30  ;;  %v1425_v51 = vmul.f32 %v1984_v39, %v972_v44  ;;  %v975_v55 = vmul.f32 %v972_v44, %v1992_v46  ;;  %v2020_v58 = vld [vmem:[#allocation2 + $0x8] sm:$0xff] }
  0xa3   :  { %v1426_v56 = vmul.f32 %v1998_v50, %v972_v44  ;;  %1012 = vst [vmem:[#allocation3 + $0x20] sm:$0xf] %v2020_v58  ;;  %v2027_v60 = vcombine.high %v2020_v58, %v2020_v58 }
  0xa4   :  { %v2015_v57 = vpop.permute.xlu1 %736 }
  0xa5   :  { %3101 = vst [vmem:[#allocation7_spill] sm:$0xff] %v2027_v60  ;;  %1013 = vst [vmem:[#allocation3 + $0x28] sm:$0xf] %v2027_v60 }
  0xa6   :  { %1332 = vrot.lane.b32.xlu0 %v1328_v62, %s1802_s30  ;;  %1334 = vrot.lane.b32.xlu1 %v1329_v63, %s1802_s30  ;;  %v2039_v62 = vpop.permute.xlu0 %922 }
  0xa9   :  { %v2033_v61 = vpop.permute.xlu1 %829 }
  0xaa   :  { %818 = vrot.lane.b32.xlu0 %v816_v0, %s1803_s7  ;;  %1347 = vrot.lane.b32.xlu1 %v1345_v1, %s1803_s7  ;;  %v640_v0 = vpop.permute.xlu0 %639 }
  0xae   :  { %1364 = vrot.lane.b32.xlu0 %v1360_v7, %s1801_s29  ;;  %858 = vrot.lane.b32.xlu1 %v854_v15, %s1801_s29  ;;  %v2041_v63 = vpop.permute.xlu1 %162  ;;  %v2055_v5 = vpop.permute.xlu0 %125 }
  0xb2   :  { %885 = vrot.lane.b32.xlu0 %v881_v22, %s1802_s30  ;;  %860 = vrot.lane.b32.xlu1 %v855_v24, %s1801_s29  ;;  %v2060_v7 = vpop.permute.xlu0 %236  ;;  %v244_v24 = vld [vmem:[#allocation2 + $0xc] sm:$0xf] }
  0xb3   :  { %v2047_v1 = vpop.permute.xlu1 %199  ;;  %3103 = vst [vmem:[#allocation9_spill] sm:$0xff] %v2060_v7 }
  0xb4   :  { %3102 = vst [vmem:[#allocation8_spill] sm:$0xff] %v2047_v1 }
  0xb6   :  { %1380 = vrot.lane.b32.xlu0 %v1376_v28, %s1802_s30  ;;  %1366 = vrot.lane.b32.xlu1 %v1361_v33, %s1801_s29  ;;  %v2070_v22 = vpop.permute.xlu0 %150 }
  0xb7   :  { %v2057_v6 = vpop.permute.xlu1 %112 }
  0xba   :  { %911 = vrot.lane.b32.xlu0 %v909_v34, %s1803_s7  ;;  %887 = vrot.lane.b32.xlu1 %v882_v37, %s1802_s30  ;;  %v281_v37 = vld [vmem:[#allocation2 + $0xc] sm:$0xf] }
  0xbb   :  { %v2062_v15 = vpop.permute.xlu1 %114 }
  0xbc   :  { %3104 = vst [vmem:[#allocation10_spill] sm:$0xff] %v2062_v15 }
  0xbe   :  { %951 = vrot.lane.b32.xlu0 %v947_v38, %s1801_s29  ;;  %1382 = vrot.lane.b32.xlu1 %v1377_v41, %s1802_s30  ;;  %v2117_v41 = vrot.slane %v2015_v57, %v1903_v29 }
  0xbf   :  { %v2072_v23 = vpop.permute.xlu1 %152 }
  0xc0   :  { %3105 = vst [vmem:[#allocation11_spill] sm:$0xff] %v2072_v23  ;;  %v1309_v57 = vmul.f32 %v1935_v53, %v2117_v41  ;;  %v373_v23 = vld [vmem:[#allocation2 + $0x10] sm:$0xf] }
  0xc2   :  { %1413 = vrot.lane.b32.xlu0 %v1409_v45, %s1801_s29  ;;  %1395 = vrot.lane.b32.xlu1 %v1393_v42, %s1803_s7 }
  0xc6   :  { %978 = vrot.lane.b32.xlu0 %v974_v47, %s1802_s30  ;;  %953 = vrot.lane.b32.xlu1 %v948_v48, %s1801_s29 }
  0xca   :  { %1429 = vrot.lane.b32.xlu0 %v1425_v51, %s1802_s30  ;;  %1415 = vrot.lane.b32.xlu1 %v1410_v52, %s1801_s29 }
  0xce   :  { %1021 = vrot.lane.b32.xlu0 %v2008_v54, %s1799_s28  ;;  %980 = vrot.lane.b32.xlu1 %v975_v55, %s1802_s30 }
  0xd2   :  { %1037 = vrot.lane.b32.xlu0 %v2008_v54, %s1797_s27  ;;  %1431 = vrot.lane.b32.xlu1 %v1426_v56, %s1802_s30  ;;  %v747_v56 = vmul.f32 %v2117_v41, %v1929_v49 }
  0xd6   :  { %110 = vrot.lane.b32.xlu0 %v1883_v18, %s1799_s28  ;;  %1023 = vrot.lane.b32.xlu1 %v2022_v59, %s1799_s28 }
  0xda   :  { %273 = vperm.xlu0 %1726, %v1879_v16   ;;  %1039 = vrot.lane.b32.xlu1 %v2022_v59, %s1797_s27 }
  0xde   :  { %187 = vrot.lane.b32.xlu0 %v1888_v20, %s1804_s8  ;;  %148 = vrot.lane.b32.xlu1 %v1883_v18, %s1797_s27 }
  0xdf   :  { %1728 = vset.pattern.permute.xlu0 %v1788_v9  ;;  %v207_v9 = vld [vmem:[#allocation2 + $0xc] sm:$0xf] }
  0xe2   :  { %1053 = vrot.lane.b32.xlu0 %v2008_v54, %s1804_s8  ;;  %1019 = vrot.lane.b32.xlu1 %v1921_v43, %s1799_s28 }
  0xe6   :  { %185 = vrot.lane.b32.xlu0 %v1883_v18, %s1804_s8  ;;  %1035 = vrot.lane.b32.xlu1 %v1921_v43, %s1797_s27 }
  0xea   :  { %356 = vperm.xlu0 %1728, %v1879_v16   ;;  %189 = vrot.lane.b32.xlu1 %v170_v2, %s1804_s8 }
  0xee   :  { %226 = vrot.lane.b32.xlu0 %v207_v9, %s1805_s9  ;;  %1055 = vrot.lane.b32.xlu1 %v2022_v59, %s1804_s8 }
  0xef   :  { %1729 = vset.pattern.permute.xlu0 %v1787_v8 }
  0xf2   :  { %1071 = vrot.lane.b32.xlu0 %v2022_v59, %s1805_s9  ;;  %310 = vperm.xlu1 %1727, %v1879_v16  }
  0xf6   :  { %347 = vperm.xlu0 %1729, %v1879_v16   ;;  %1051 = vrot.lane.b32.xlu1 %v1921_v43, %s1804_s8 }
  0xf7   :  { %1732 = vset.pattern.permute.xlu1 %v1791_v12  ;;  %v2094_v12 = vrot.slane %v640_v0, %v1903_v29 }
  0xf8   :  { %v2077_v26 = vpop.permute.xlu0 %670  ;;  %v2079_v28 = vpop.permute.xlu1 %668 }
  0xf9   :  { %v1261_v36 = vmul.f32 %v1909_v35, %v2094_v12  ;;  %v673_v30 = vrot.slane %v2077_v26, 4 }
  0xfa   :  { %263 = vrot.lane.b32.xlu0 %v244_v24, %s1806_s10  ;;  %224 = vrot.lane.b32.xlu1 %v1888_v20, %s1805_s9 }
  0xfb   :  { %1730 = vset.pattern.permute.xlu0 %v1798_v21  ;;  %v650_v21 = vmul.f32 %v2094_v12, %v1905_v31 }
  0xfc   :  { %v2085_v8 = vpop.permute.xlu0 %1270  ;;  %v2087_v32 = vpop.permute.xlu1 %1268 }
  0xfd   :  { %v681_v31 = vadd.f32 %v2077_v26, %v650_v21  ;;  %v1279_v42 = vadd.f32 %v2085_v8, %v1261_v36  ;;  %v318_v21 = vld [vmem:[#allocation2 + $0xc] sm:$0xf] }
  0xfe   :  { %1087 = vrot.lane.b32.xlu0 %v2022_v59, %s1806_s10  ;;  %1069 = vrot.lane.b32.xlu1 %v2008_v54, %s1805_s9 }
 0x100   :  { %v2096_v33 = vpop.permute.xlu0 %699  ;;  %v2098_v34 = vpop.permute.xlu1 %697 }
 0x101   :  { %v709_v45 = vadd.f32 %v2096_v33, %v681_v31  ;;  %v702_v26 = vrot.slane %v2096_v33, 4 }
 0x102   :  { %1083 = vrot.lane.b32.xlu0 %v1921_v43, %s1806_s10  ;;  %222 = vrot.lane.b32.xlu1 %v1883_v18, %s1805_s9 }
 0x104   :  { %v2108_v38 = vpop.permute.xlu0 %1286  ;;  %v2110_v40 = vpop.permute.xlu1 %1284 }
 0x105   :  { %v1295_v47 = vadd.f32 %v2108_v38, %v1279_v42  ;;  %v1288_v60 = vrot.slane %v2110_v40, 4 }
 0x106   :  { %300 = vrot.lane.b32.xlu0 %v281_v37, %s1807_s11  ;;  %1067 = vrot.lane.b32.xlu1 %v1921_v43, %s1805_s9 }
 0x108   :  { %v2121_v35 = vpop.permute.xlu0 %1299  ;;  %v2123_v44 = vpop.permute.xlu1 %724 }
 0x109   :  { %v3077_v48 = vrot.slane %v2121_v35, 4  ;;  %v3078_v51 = vrot.slane %v2123_v44, 4 }
 0x10a   :  { %1103 = vrot.lane.b32.xlu0 %v2022_v59, %s1807_s11  ;;  %261 = vrot.lane.b32.xlu1 %v1888_v20, %s1806_s10 }
 0x10b   :  { %v1306_v52 = vadd.f32 %v3077_v48, %v1295_v47  ;;  %v732_v55 = vadd.f32 %v3078_v51, %v709_v45  ;;  %v2177_v45 = vrot.slane %v2033_v61, %v1903_v29  ;;  %v2195_v61 = vcombine.high %v1865_v4, %v1865_v4 }
 0x10c   :  { %v2141_v0 = vpop.permute.xlu0 %765  ;;  %v2143_v2 = vpop.permute.xlu1 %767 }
 0x10d   :  { %v749_v9 = vadd.f32 %v747_v56, %v732_v55  ;;  %v1311_v24 = vadd.f32 %v1309_v57, %v1306_v52 }
 0x10e   :  { %402 = vperm.xlu0 %1730, %v1879_v16   ;;  %1085 = vrot.lane.b32.xlu1 %v2008_v54, %s1806_s10 }
 0x110   :  { %v2148_v36 = vpop.permute.xlu0 %1316  ;;  %v2150_v37 = vpop.permute.xlu1 %1318 }
 0x111   :  { %v1327_v47 = vadd.f32 %v2150_v37, %v1311_v24 }
 0x112   :  { %337 = vrot.lane.b32.xlu0 %v318_v21, %s1808_s12  ;;  %259 = vrot.lane.b32.xlu1 %v1883_v18, %s1806_s10 }
 0x113   :  { %1731 = vset.pattern.permute.xlu0 %v1789_v10  ;;  %v2173_v10 = vcombine.high %v1860_v3, %v1860_v3 }
 0x114   :  { %v2156_v49 = vpop.permute.xlu0 %792  ;;  %v2158_v53 = vpop.permute.xlu1 %794 }
 0x116   :  { %1119 = vrot.lane.b32.xlu0 %v2022_v59, %s1808_s12  ;;  %298 = vrot.lane.b32.xlu1 %v1888_v20, %s1807_s11  ;;  %v776_v59 = vadd.f32 %v2143_v2, %v749_v9 }
 0x118   :  { %v2164_v31 = vpop.permute.xlu0 %1332  ;;  %v2166_v42 = vpop.permute.xlu1 %1334  ;;  %v803_v56 = vadd.f32 %v2158_v53, %v776_v59  ;;  %v840_v59 = vmul.f32 %v2177_v45, %v1961_v19 }
 0x119   :  { %v1343_v57 = vadd.f32 %v2166_v42, %v1327_v47  ;;  %v1357_v47 = vmul.f32 %v1967_v25, %v2177_v45 }
 0x11a   :  { %439 = vperm.xlu0 %1731, %v1879_v16   ;;  %1101 = vrot.lane.b32.xlu1 %v2008_v54, %s1807_s11 }
 0x11c   :  { %v2181_v52 = vpop.permute.xlu0 %818  ;;  %v2183_v55 = vpop.permute.xlu1 %1347 }
 0x11d   :  { %v3081_v21 = vrot.slane %v2181_v52, 4  ;;  %v3080_v17 = vrot.slane %v2183_v55, 4 }
 0x11e   :  { %390 = vrot.lane.b32.xlu0 %v2173_v10, %s1809_s13  ;;  %296 = vrot.lane.b32.xlu1 %v1883_v18, %s1807_s11 }
 0x11f   :  { %v825_v9 = vadd.f32 %v3081_v21, %v803_v56  ;;  %v1354_v24 = vadd.f32 %v3080_v17, %v1343_v57  ;;  %1738 = vset.pattern.permute.xlu0 %v1790_v11  ;;  %v410_v56 = vld [vmem:[#allocation2 + $0x10] sm:$0xf]  ;;  %v2214_v57 = vld [vmem:[#allocation2 + $0x20] sm:$0xf] }
 0x120   :  { %v2206_v14 = vpop.permute.xlu0 %1364  ;;  %v2208_v48 = vpop.permute.xlu1 %858  ;;  %v1739_v25 = vpack.i.bf16 %v2214_v57, %v410_v56 }
 0x121   :  { %v842_v51 = vadd.f32 %v840_v59, %v825_v9  ;;  %v1359_v13 = vadd.f32 %v1357_v47, %v1354_v24  ;;  %v3082_v47 = vmov 0  }
 0x122   :  { %1144 = vrot.lane.b32.xlu0 %v2195_v61, %s1809_s13  ;;  %1099 = vrot.lane.b32.xlu1 %v1921_v43, %s1807_s11 }
 0x124   :  { %v2216_v19 = vpop.permute.xlu0 %885  ;;  %v2218_v11 = vpop.permute.xlu1 %860 }
 0x125   :  { %v869_v59 = vadd.f32 %v2218_v11, %v842_v51  ;;  %v447_v51 = vld [vmem:[#allocation2 + $0x10] sm:$0xf] }
 0x126   :  { %513 = vperm.xlu0 %1738, %v1879_v16   ;;  %335 = vrot.lane.b32.xlu1 %v1888_v20, %s1808_s12  ;;  %v2235_v20 = vrot.slane %v2039_v62, %v1903_v29 }
 0x128   :  { %v2224_v9 = vpop.permute.xlu0 %1380  ;;  %v2226_v24 = vpop.permute.xlu1 %1366  ;;  %v933_v29 = vmul.f32 %v2235_v20, %v1992_v46 }
 0x129   :  { %3106 = vst [vmem:[#allocation12_spill] sm:$0xff] %v2224_v9  ;;  %v1375_v7 = vadd.f32 %v2226_v24, %v1359_v13  ;;  %v1273_v13 = vrot.slane %v2085_v8, 4  ;;  %v1289_v8 = vrot.slane %v2108_v38, 4 }
 0x12a   :  { %1740 = vrot.lane.b32.xlu0 %v1739_v25, %s1810_s14  ;;  %1117 = vrot.lane.b32.xlu1 %v2008_v54, %s1808_s12 }
 0x12b   :  { %1772 = vset.pattern.permute.xlu0 %v3082_v47 }
 0x12c   :  { %v2237_v56 = vpop.permute.xlu0 %911  ;;  %v2239_v17 = vpop.permute.xlu1 %887 }
 0x12d   :  { %3107 = vst [vmem:[#allocation13_spill] sm:$0xff] %v2237_v56  ;;  %v3085_v21 = vrot.slane %v2237_v56, 4  ;;  %v896_v25 = vadd.f32 %v2239_v17, %v869_v59  ;;  %v2258_v59 = vld [vmem:[%s3071_s5] sm:$0x3]  ;;  %v672_v56 = vrot.slane %v2079_v28, 4 }
 0x12e   :  { %425 = vrot.lane.b32.xlu0 %v1860_v3, %s1810_s14  ;;  %333 = vrot.lane.b32.xlu1 %v1883_v18, %s1808_s12  ;;  %v38_v46 = vadd.s32 4294967282, %v2258_v59  ;;  %v42_v15 = vadd.s32 4294967284, %v2258_v59 }
 0x12f   :  { %v918_v54 = vadd.f32 %v3085_v21, %v896_v25  ;;  %v1745_v25 = vpack.i.bf16 %v2214_v57, %v447_v51  ;;  %v1733_v51 = vpack.i.bf16 %v2214_v57, %v373_v23  ;;  %v675_v23 = vsel %vm674_vm0, %v672_v56, %v673_v30 }
 0x130   :  { %v2249_v62 = vpop.permute.xlu0 %951  ;;  %v2251_v47 = vpop.permute.xlu1 %1382  ;;  %vm39_vm2 = vcmp.ge.s32.totalorder %v38_v46, 0  ;;  %vm40_vm3 = vcmp.lt.s32.totalorder %v38_v46, 16  ;;  %vm43_vm4 = vcmp.ge.s32.totalorder %v42_v15, 0  ;;  %vm44_vm5 = vcmp.lt.s32.totalorder %v42_v15, 16 }
 0x131   :  { %3108 = vst [vmem:[#allocation14_spill] sm:$0xff] %v2249_v62  ;;  %v2265_v21 = vadd.f32 %v933_v29, %v918_v54  ;;  %v1391_v62 = vadd.f32 %v2251_v47, %v1375_v7  ;;  %v1272_v54 = vrot.slane %v2087_v32, 4  ;;  %v3112_v30 = vmov 13   ;;  %vm41_vm7 = vmand %vm39_vm2, %vm40_vm3 }
 0x132   :  { %1158 = vrot.lane.b32.xlu0 %v1865_v4, %s1810_s14  ;;  %1115 = vrot.lane.b32.xlu1 %v1921_v43, %s1808_s12  ;;  %v1290_v56 = vsel %vm674_vm0, %v1288_v60, %v1289_v8  ;;  %vm45_vm9 = vmand %vm43_vm4, %vm44_vm5  ;;  %v2328_v15 = vsub.s32 1, %v1900_v27  ;;  %vm191_vm5 = vcmask 80896  }
 0x133   :  { %3109 = vst [vmem:[#allocation15_spill] sm:$0xff] %v2265_v21  ;;  %v701_v21 = vrot.slane %v2098_v34, 4  ;;  %v1291_v46 = vsel %vm704_vm6, %v2110_v40, %v1290_v56  ;;  %v769_v40 = vrot.slane %v2141_v0, 4  ;;  %v3115_v56 = vrot.slane %v2121_v35, 4 }
 0x134   :  { %v2270_v1 = vpop.permute.xlu0 %1413  ;;  %v2272_v39 = vpop.permute.xlu1 %1395 }
 0x135   :  { %3110 = vst [vmem:[#allocation16_spill] sm:$0xff] %v2270_v1  ;;  %v3097_v29 = vrot.slane %v2272_v39, 4  ;;  %v1406_v1 = vmul.f32 %v1998_v50, %v2235_v20  ;;  %v649_v50 = vmul.f32 0.0, %v2094_v12  ;;  %v703_v38 = vsel %vm674_vm0, %v701_v21, %v702_v26 }
 0x136   :  { %1746 = vrot.lane.b32.xlu0 %v1745_v25, %s1812_s17  ;;  %476 = vperm.xlu1 %1732, %v1879_v16   ;;  %v705_v21 = vsel %vm704_vm6, %v2098_v34, %v703_v38  ;;  %v3114_v34 = vrot.slane %v2123_v44, 4  ;;  %v770_v38 = vrot.slane %v2143_v2, 4 }
 0x137   :  { %v1402_v7 = vadd.f32 %v3097_v29, %v1391_v62  ;;  %v1274_v62 = vsel %vm674_vm0, %v1272_v54, %v1273_v13  ;;  %v484_v29 = vld [vmem:[#allocation2 + $0x10] sm:$0xf] }
 0x138   :  { %v2291_v9 = vpop.permute.xlu0 %978  ;;  %v2293_v25 = vpop.permute.xlu1 %953  ;;  %v1275_v12 = vsel %vm676_vm1, %v2087_v32, %v1274_v62  ;;  %v1751_v60 = vpack.i.bf16 %v2214_v57, %v484_v29 }
 0x139   :  { %v2296_v33 = vadd.f32 %v1406_v1, %v1402_v7  ;;  %v677_v1 = vsel %vm676_vm1, %v2079_v28, %v675_v23  ;;  %v1278_v26 = vadd.f32 %v1275_v12, %v649_v50  ;;  %v728_v7 = vsel %vm727_vm8, %v3114_v34, %v2123_v44 }
 0x13a   :  { %462 = vrot.lane.b32.xlu0 %v1860_v3, %s1812_s17  ;;  %1734 = vrot.lane.b32.xlu1 %v1733_v51, %s1809_s13  ;;  %v680_v28 = vadd.f32 %v677_v1, %v649_v50  ;;  %v3113_v51 = vmov 0   ;;  %v1320_v1 = vrot.slane %v2148_v36, 4  ;;  %v1321_v50 = vrot.slane %v2150_v37, 4 }
 0x13b   :  { %3111 = vst [vmem:[#allocation17_spill] sm:$0xff] %v2296_v33  ;;  %1744 = vset.pattern.permute.xlu1 %v3112_v30  ;;  %v96_v32 = vsel %vm41_vm7, 1, %v3113_v51  ;;  %v134_v29 = vsel %vm45_vm9, 1, %v3113_v51  ;;  %v1294_v30 = vadd.f32 %v1291_v46, %v1278_v26  ;;  %v2347_v44 = vsub.s32 0, %v1900_v27 }
 0x13c   :  { %v2308_v13 = vpop.permute.xlu0 %1429  ;;  %v2310_v54 = vpop.permute.xlu1 %1415  ;;  %v708_v62 = vadd.f32 %v705_v21, %v680_v28  ;;  %v1302_v12 = vsel %vm727_vm8, %v3115_v56, %v2121_v35  ;;  %v796_v21 = vrot.slane %v2156_v49, 4  ;;  %v797_v28 = vrot.slane %v2158_v53, 4 }
 0x13d   :  { %v104_v37 = vrot.slane %v96_v32, %v2328_v15  ;;  %v746_v27 = vmul.f32 %v2117_v41, %v1883_v18  ;;  %v771_v26 = vsel %vm674_vm0, %v769_v40, %v770_v38  ;;  %v1336_v34 = vrot.slane %v2164_v31, 4  ;;  %v521_v38 = vld [vmem:[#allocation2 + $0x10] sm:$0xf] }
 0x13e   :  { %1174 = vrot.lane.b32.xlu0 %v1865_v4, %s1812_s17  ;;  %388 = vrot.lane.b32.xlu1 %v1860_v3, %s1809_s13  ;;  %v731_v2 = vadd.f32 %v728_v7, %v708_v62  ;;  %v1337_v35 = vrot.slane %v2166_v42, 4  ;;  %v142_v7 = vrot.slane %v134_v29, %v2328_v15  ;;  %v1305_v62 = vadd.f32 %v1302_v12, %v1294_v30 }
 0x13f   :  { %v1322_v53 = vsel %vm674_vm0, %v1320_v1, %v1321_v50  ;;  %v798_v18 = vsel %vm674_vm0, %v796_v21, %v797_v28  ;;  %v100_v40 = vrot.slane %v96_v32, %v2347_v44  ;;  %v138_v42 = vrot.slane %v134_v29, %v2347_v44 }
 0x140   :  { %v2334_v8 = vpop.permute.xlu0 %1021  ;;  %v2336_v23 = vpop.permute.xlu1 %980  ;;  %v748_v56 = vadd.f32 %v746_v27, %v731_v2  ;;  %vm2374_vm11 = vcmp.eq.s32.totalorder %v104_v37, 1  ;;  %v1308_v30 = vmul.f32 %v1921_v43, %v2117_v41  ;;  %v772_v1 = vsel %vm676_vm1, %v2141_v0, %v771_v26 }
 0x141   :  { %v1338_v12 = vsel %vm674_vm0, %v1336_v34, %v1337_v35  ;;  %v839_v32 = vmul.f32 %v2177_v45, %v1860_v3  ;;  %v1323_v29 = vsel %vm676_vm1, %v2148_v36, %v1322_v53  ;;  %vm2389_vm13 = vcmp.eq.s32.totalorder %v142_v7, 1 }
 0x142   :  { %1752 = vrot.lane.b32.xlu0 %v1751_v60, %s1813_s18  ;;  %1142 = vrot.lane.b32.xlu1 %v1865_v4, %s1809_s13  ;;  %v1310_v43 = vadd.f32 %v1308_v30, %v1305_v62  ;;  %v799_v41 = vsel %vm704_vm6, %v2156_v49, %v798_v18  ;;  %v775_v36 = vadd.f32 %v772_v1, %v748_v56  ;;  %vm2400_vm14 = vcmp.eq.s32.totalorder %v100_v40, 1 }
 0x143   :  { %vm2404_vm15 = vcmp.eq.s32.totalorder %v138_v42, 1  ;;  %v46_v49 = vadd.s32 4294967286, %v2258_v59  ;;  %v1339_v26 = vsel %vm704_vm6, %v2164_v31, %v1338_v12  ;;  %v863_v34 = vrot.slane %v2218_v11, 4 }
 0x144   :  { %v2356_v46 = vpop.permute.xlu0 %1037  ;;  %v2358_v60 = vpop.permute.xlu1 %1431  ;;  %v1326_v27 = vadd.f32 %v1323_v29, %v1310_v43  ;;  %v802_v62 = vadd.f32 %v799_v41, %v775_v36  ;;  %v3124_v53 = vrot.slane %v2181_v52, 4  ;;  %v862_v31 = vrot.slane %v2208_v48, 4 }
 0x145   :  { %v889_v11 = vrot.slane %v2216_v19, 4  ;;  %v3125_v30 = vrot.slane %v2183_v55, 4  ;;  %vm47_vm2 = vcmp.ge.s32.totalorder %v46_v49, 0  ;;  %vm48_vm3 = vcmp.lt.s32.totalorder %v46_v49, 16 }
 0x146   :  { %499 = vrot.lane.b32.xlu0 %v1860_v3, %s1813_s18  ;;  %427 = vrot.lane.b32.xlu1 %v2173_v10, %s1810_s14  ;;  %v1757_v3 = vpack.i.bf16 %v2214_v57, %v521_v38  ;;  %v821_v56 = vsel %vm727_vm8, %v3124_v53, %v2181_v52  ;;  %v890_v38 = vrot.slane %v2239_v17, 4  ;;  %v1342_v52 = vadd.f32 %v1339_v26, %v1326_v27  ;;  %v3127_v53 = vld [vmem:[#allocation12_spill] sm:$0xff]  ;;  %vm49_vm4 = vmand %vm47_vm2, %vm48_vm3 }
 0x147   :  { %v1350_v1 = vsel %vm727_vm8, %v3125_v30, %v2183_v55  ;;  %v824_v29 = vadd.f32 %v821_v56, %v802_v62  ;;  %v864_v17 = vsel %vm674_vm0, %v862_v31, %v863_v34  ;;  %v1368_v55 = vrot.slane %v2206_v14, 4  ;;  %v3129_v30 = vld [vmem:[#allocation14_spill] sm:$0xff] }
 0x148   :  { %v1024_v50 = vpop.permute.xlu1 %1023  ;;  %v111_v0 = vpop.permute.xlu0 %110  ;;  %v891_v36 = vsel %vm674_vm0, %v889_v11, %v890_v38  ;;  %v1385_v27 = vrot.slane %v2251_v47, 4  ;;  %v1353_v26 = vadd.f32 %v1350_v1, %v1342_v52  ;;  %v865_v34 = vsel %vm676_vm1, %v2208_v48, %v864_v17 }
 0x149   :  { %v1026_v2 = vsel %vm116_vm10, %v2334_v8, %v1024_v50  ;;  %v117_v18 = vsel %vm116_vm10, %v111_v0, %v2057_v6  ;;  %v3126_v62 = vmov 14   ;;  %v841_v47 = vadd.f32 %v839_v32, %v824_v29  ;;  %v3128_v32 = vld [vmem:[#allocation7_spill] sm:$0xff]  ;;  %v3130_v29 = vld [vmem:[#allocation13_spill] sm:$0xff] }
 0x14a   :  { %1190 = vrot.lane.b32.xlu0 %v1865_v4, %s1813_s18  ;;  %1160 = vrot.lane.b32.xlu1 %v2195_v61, %s1810_s14  ;;  %v1030_v35 = vsel %vm2374_vm11, %v1026_v2, 0.0  ;;  %v1369_v2 = vrot.slane %v2226_v24, 4  ;;  %v121_v43 = vsel %vm2400_vm14, %v117_v18, 0.0  ;;  %v1384_v56 = vrot.slane %v3127_v53, 4 }
 0x14b   :  { %v1032_v50 = vmul.f32 %v1030_v35, %v2055_v5  ;;  %v128_v35 = vmul.f32 %v2055_v5, %v121_v43  ;;  %v1356_v31 = vmul.f32 %v1865_v4, %v2177_v45  ;;  %v892_v11 = vsel %vm704_vm6, %v2216_v19, %v891_v36 }
 0x14c   :  { %v1040_v7 = vpop.permute.xlu1 %1039  ;;  %v1370_v18 = vsel %vm674_vm0, %v1368_v55, %v1369_v2  ;;  %v1386_v52 = vsel %vm674_vm0, %v1384_v56, %v1385_v27  ;;  %v956_v1 = vrot.slane %v2293_v25, 4  ;;  %v3131_v17 = vrot.slane %v3130_v29, 4  ;;  %v595_v27 = vld [vmem:[#allocation2 + $0x10] sm:$0xf] }
 0x14d   :  { %v1042_v40 = vsel %vm154_vm12, %v2356_v46, %v1040_v7  ;;  %v1358_v4 = vadd.f32 %v1356_v31, %v1353_v26  ;;  %v1371_v45 = vsel %vm676_vm1, %v2206_v14, %v1370_v18  ;;  %v1387_v49 = vsel %vm704_vm6, %v3127_v53, %v1386_v52 }
 0x14e   :  { %v1046_v42 = vsel %vm2389_vm13, %v1042_v40, 0.0  ;;  %1758 = vrot.lane.b32.xlu0 %v1757_v3, %s1814_s19  ;;  %550 = vperm.xlu1 %1744, %v1879_v16   ;;  %v914_v2 = vsel %vm727_vm8, %v3131_v17, %v3130_v29  ;;  %v982_v28 = vrot.slane %v2291_v9, 4  ;;  %v983_v55 = vrot.slane %v2336_v23, 4 }
 0x14f   :  { %v1048_v12 = vmul.f32 %v1046_v42, %v2041_v63  ;;  %v868_v42 = vadd.f32 %v865_v34, %v841_v47  ;;  %v1418_v37 = vrot.slane %v2310_v54, 4  ;;  %v3133_v53 = vrot.slane %v2272_v39, 4 }
 0x150   :  { %v149_v41 = vpop.permute.xlu1 %148  ;;  %v1767_v31 = vpack.i.bf16 %v2214_v57, %v595_v27  ;;  %v1434_v52 = vrot.slane %v2358_v60, 4 }
 0x151   :  { %v2439_v0 = vadd.f32 %v1048_v12, %v1032_v50  ;;  %v155_v3 = vsel %vm154_vm12, %v149_v41, %v2070_v22  ;;  %v895_v19 = vadd.f32 %v892_v11, %v868_v42  ;;  %v171_v41 = vsel %vm49_vm4, 1, %v3113_v51  ;;  %v3134_v11 = vld [vmem:[#allocation16_spill] sm:$0xff] }
 0x152   :  { %v159_v24 = vsel %vm2404_vm15, %v155_v3, 0.0  ;;  %536 = vrot.lane.b32.xlu0 %v2020_v58, %s1814_s19  ;;  %464 = vrot.lane.b32.xlu1 %v2173_v10, %s1812_s17  ;;  %v1374_v3 = vadd.f32 %v1371_v45, %v1358_v4  ;;  %v179_v18 = vrot.slane %v171_v41, %v2328_v15  ;;  %v984_v42 = vsel %vm674_vm0, %v982_v28, %v983_v55  ;;  %v2518_v45 = vld [vmem:[#allocation2 + $0x18] sm:$0xff] }
 0x153   :  { %v165_v7 = vmul.f32 %v2041_v63, %v159_v24  ;;  %1750 = vset.pattern.permute.xlu1 %v3126_v62  ;;  %v3132_v24 = vld [vmem:[#allocation5_spill] sm:$0xff]  ;;  %vm265_vm4 = vcmask 48128  }
 0x154   :  { %v1020_v40 = vpop.permute.xlu1 %1019  ;;  %vm2535_vm7 = vcmp.eq.s32.totalorder %v179_v18, 1 }
 0x155   :  { %v2463_v38 = vadd.f32 %v165_v7, %v128_v35  ;;  %v1025_v48 = vsel %vm116_vm10, %v1020_v40, %v2334_v8  ;;  %v955_v8 = vrot.slane %v3129_v30, 4  ;;  %v917_v35 = vadd.f32 %v914_v2, %v895_v19  ;;  %v3136_v2 = vld [vmem:[#allocation6_spill] sm:$0xff] }
 0x156   :  { %575 = vrot.lane.b32.xlu0 %v3128_v32, %s1815_s20  ;;  %1176 = vrot.lane.b32.xlu1 %v2195_v61, %s1812_s17  ;;  %v1029_v50 = vsel %vm2400_vm14, %v1025_v48, 0.0  ;;  %v1390_v7 = vadd.f32 %v1387_v49, %v1374_v3  ;;  %v1417_v48 = vrot.slane %v3134_v11, 4  ;;  %v175_v19 = vrot.slane %v171_v41, %v2347_v44 }
 0x157   :  { %v1031_v26 = vmul.f32 %v1029_v50, %v2055_v5  ;;  %v957_v62 = vsel %vm674_vm0, %v955_v8, %v956_v1  ;;  %v3135_v8 = vmov 15   ;;  %v1433_v50 = vrot.slane %v2308_v13, 4 }
 0x158   :  { %v1036_v12 = vpop.permute.xlu1 %1035  ;;  %v1405_v49 = vmul.f32 %v3136_v2, %v2235_v20 }
 0x159   :  { %v1041_v14 = vsel %vm154_vm12, %v1036_v12, %v2356_v46  ;;  %v2488_v43 = vpop.permute.xlu0 %273  ;;  %v932_v46 = vmul.f32 %v2235_v20, %v3132_v24  ;;  %v1419_v12 = vsel %vm674_vm0, %v1417_v48, %v1418_v37  ;;  %v3142_v48 = vld [vmem:[#allocation10_spill] sm:$0xff] }
 0x15a   :  { %v1045_v36 = vsel %vm2404_vm15, %v1041_v14, 0.0  ;;  %1224 = vrot.lane.b32.xlu0 %v2195_v61, %s1815_s20  ;;  %587 = vperm.xlu1 %1750, %v1879_v16   ;;  %v1398_v16 = vsel %vm727_vm8, %v3133_v53, %v2272_v39  ;;  %v958_v39 = vsel %vm676_vm1, %v3129_v30, %v957_v62  ;;  %v1435_v30 = vsel %vm674_vm0, %v1433_v50, %v1434_v52  ;;  %v1780_v62 = vld [vmem:[%s3070_s1] sm:$0xf] }
 0x15b   :  { %v1047_v34 = vmul.f32 %v1045_v36, %v2041_v63  ;;  %v1401_v1 = vadd.f32 %v1398_v16, %v1390_v7  ;;  %v934_v17 = vadd.f32 %v932_v46, %v917_v35  ;;  %v1420_v20 = vsel %vm676_vm1, %v3134_v11, %v1419_v12  ;;  %v3139_v36 = vld [vmem:[#allocation8_spill] sm:$0xff] }
 0x15c   :  { %v190_v47 = vpop.permute.xlu1 %189  ;;  %vm2548_vm8 = vcmp.eq.s32.totalorder %v175_v19, 1 }
 0x15d   :  { %v2508_v56 = vadd.f32 %v1047_v34, %v1031_v26  ;;  %v188_v40 = vpop.permute.xlu0 %187  ;;  %v961_v28 = vadd.f32 %v958_v39, %v934_v17  ;;  %v1407_v55 = vadd.f32 %v1405_v49, %v1401_v1  ;;  %v1436_v26 = vsel %vm704_vm6, %v2308_v13, %v1435_v30  ;;  %v558_v39 = vld [vmem:[#allocation2 + $0x10] sm:$0xf] }
 0x15e   :  { %v2516_v4 = vsel %vm191_vm5, %v188_v40, %v190_v47  ;;  %1222 = vrot.lane.b32.xlu0 %v2518_v45, %s1815_s20  ;;  %501 = vrot.lane.b32.xlu1 %v2173_v10, %s1813_s18  ;;  %v985_v10 = vsel %vm704_vm6, %v2291_v9, %v984_v42  ;;  %v50_v13 = vadd.s32 4294967288, %v2258_v59  ;;  %v3143_v42 = vld [vmem:[#allocation11_spill] sm:$0xff]  ;;  %v54_v30 = vadd.s32 4294967290, %v2258_v59 }
 0x15f   :  { %1756 = vset.pattern.permute.xlu1 %v3135_v8  ;;  %v988_v46 = vadd.f32 %v985_v10, %v961_v28  ;;  %v1423_v37 = vadd.f32 %v1420_v20, %v1407_v55  ;;  %v156_v52 = vsel %vm154_vm12, %v2070_v22, %v3143_v42  ;;  %v197_v33 = vsel %vm2535_vm7, %v2516_v4, 0.0 }
 0x160   :  { %v1056_v29 = vpop.permute.xlu1 %1055  ;;  %vm51_vm6 = vcmp.ge.s32.totalorder %v50_v13, 0  ;;  %vm52_vm9 = vcmp.lt.s32.totalorder %v50_v13, 16  ;;  %vm56_vm15 = vcmp.lt.s32.totalorder %v54_v30, 16 }
 0x161   :  { %v1054_v14 = vpop.permute.xlu0 %1053  ;;  %v1439_v16 = vadd.f32 %v1436_v26, %v1423_v37  ;;  %vm53_vm14 = vmand %vm51_vm6, %vm52_vm9 }
 0x162   :  { %v1058_v3 = vsel %vm191_vm5, %v1054_v14, %v1056_v29  ;;  %1768 = vrot.lane.b32.xlu0 %v1767_v31, %s1816_s21  ;;  %1192 = vrot.lane.b32.xlu1 %v2195_v61, %s1813_s18  ;;  %v208_v50 = vsel %vm53_vm14, 1, %v3113_v51  ;;  %v160_v29 = vsel %vm2389_vm13, %v156_v52, 0.0  ;;  %vm55_vm13 = vcmp.ge.s32.totalorder %v54_v30, 0 }
 0x163   :  { %v1062_v9 = vsel %vm2535_vm7, %v1058_v3, 0.0  ;;  %v2575_v31 = vmax.f32 %v1439_v16, 0.0  ;;  %v216_v22 = vrot.slane %v208_v50, %v2328_v15  ;;  %v166_v2 = vmul.f32 %v2041_v63, %v160_v29  ;;  %vm57_vm2 = vmand %vm55_vm13, %vm56_vm15 }
 0x164   :  { %v1064_v27 = vmul.f32 %v1062_v9, %v3139_v36  ;;  %v212_v24 = vrot.slane %v208_v50, %v2347_v44  ;;  %v58_v52 = vadd.s32 4294967292, %v2258_v59  ;;  %vm302_vm14 = vcmask 31744  }
 0x165   :  { %v186_v34 = vpop.permute.xlu0 %185 }
 0x166   :  { %v2555_v35 = vadd.f32 %v1064_v27, %v2439_v0  ;;  %v192_v7 = vsel %vm191_vm5, %v186_v34, %v188_v40  ;;  %610 = vrot.lane.b32.xlu0 %v2020_v58, %s1816_s21  ;;  %624 = vperm.xlu1 %1756, %v1780_v62   ;;  %v990_v0 = vmax.f32 %v988_v46, 0.0  ;;  %v3147_v34 = vld [vmem:[#allocation15_spill] sm:$0xff]  ;;  %vm2634_vm3 = vcmp.eq.s32.totalorder %v212_v24, 1 }
 0x167   :  { %v196_v47 = vsel %vm2548_vm8, %v192_v7, 0.0  ;;  %vm59_vm7 = vcmp.ge.s32.totalorder %v58_v52, 0 }
 0x168   :  { %v202_v53 = vmul.f32 %v3139_v36, %v196_v47  ;;  %v994_v19 = vcombine.low %v990_v0, %v990_v0 }
 0x169   :  { %v2567_v18 = vpop.permute.xlu0 %356 }
 0x16a   :  { %v2570_v40 = vadd.f32 %v202_v53, %v2463_v38  ;;  %538 = vrot.lane.b32.xlu1 %v3128_v32, %s1814_s19  ;;  %998 = vrot.lane.b32.xlu0 %v990_v0, %s1801_s29  ;;  %v118_v38 = vsel %vm116_vm10, %v2057_v6, %v3142_v48  ;;  %v1762_v6 = vpack.i.bf16 %v2214_v57, %v558_v39  ;;  %vm228_vm10 = vcmask 64512  }
 0x16b   :  { %v122_v12 = vsel %vm2374_vm11, %v118_v38, 0.0  ;;  %vm2613_vm11 = vcmp.eq.s32.totalorder %v216_v22, 1  ;;  %v245_v0 = vsel %vm57_vm2, 1, %v3113_v51 }
 0x16c   :  { %v129_v17 = vmul.f32 %v2055_v5, %v122_v12  ;;  %v203_v5 = vmul.f32 %v3139_v36, %v197_v33  ;;  %v253_v42 = vrot.slane %v245_v0, %v2328_v15 }
 0x16d   :  { %v227_v11 = vpop.permute.xlu0 %226 }
 0x16e   :  { %1208 = vrot.lane.b32.xlu1 %v2195_v61, %s1814_s19  ;;  %1449 = vrot.lane.b32.xlu0 %v2575_v31, %s1801_s29  ;;  %v168_v4 = vadd.f32 %v166_v2, %v129_v17 }
 0x170   :  { %v205_v55 = vadd.f32 %v203_v5, %v168_v4 }
 0x171   :  { %v1072_v8 = vpop.permute.xlu0 %1071  ;;  %v2587_v1 = vpop.permute.xlu1 %310 }
 0x172   :  { %1206 = vrot.lane.b32.xlu1 %v2518_v45, %s1814_s19  ;;  %996 = vrot.lane.b32.xlu0 %v994_v19, %s1801_s29 }
 0x175   :  { %v2604_v49 = vpop.permute.xlu0 %347  ;;  %v1052_v21 = vpop.permute.xlu1 %1051 }
 0x176   :  { %v1057_v10 = vsel %vm191_vm5, %v1052_v21, %v1054_v14  ;;  %1763 = vrot.lane.b32.xlu1 %v1762_v6, %s1815_s20  ;;  %vm2657_vm5 = vcmp.eq.s32.totalorder %v253_v42, 1 }
 0x177   :  { %v1061_v57 = vsel %vm2548_vm8, %v1057_v10, 0.0  ;;  %vm60_vm8 = vcmp.lt.s32.totalorder %v58_v52, 16 }
 0x178   :  { %v1063_v63 = vmul.f32 %v1061_v57, %v3139_v36  ;;  %v3146_v36 = vld [vmem:[#allocation9_spill] sm:$0xff]  ;;  %vm61_vm6 = vmand %vm59_vm7, %vm60_vm8 }
 0x179   :  { %v264_v3 = vpop.permute.xlu0 %263  ;;  %v225_v28 = vpop.permute.xlu1 %224  ;;  %v282_v4 = vsel %vm61_vm6, 1, %v3113_v51 }
 0x17a   :  { %v1065_v14 = vadd.f32 %v1063_v63, %v2508_v56  ;;  %v230_v20 = vsel %vm228_vm10, %v225_v28, %v227_v11  ;;  %573 = vrot.lane.b32.xlu1 %v2020_v58, %s1815_s20  ;;  %v962_v56 = vadd.f32 %v2293_v25, %v3147_v34  ;;  %v3150_v11 = vld [vmem:[#allocation17_spill] sm:$0xff]  ;;  %v290_v34 = vrot.slane %v282_v4, %v2328_v15 }
 0x17b   :  { %v234_v9 = vsel %vm2613_vm11, %v230_v20, 0.0  ;;  %v1424_v48 = vadd.f32 %v2310_v54, %v3150_v11 }
 0x17c   :  { %v240_v27 = vmul.f32 %v3146_v36, %v234_v9  ;;  %v989_v47 = vadd.f32 %v2336_v23, %v962_v56 }
 0x17d   :  { %v1088_v46 = vpop.permute.xlu0 %1087  ;;  %v1070_v26 = vpop.permute.xlu1 %1069  ;;  %v1440_v19 = vadd.f32 %v2358_v60, %v1424_v48 }
 0x17e   :  { %v242_v7 = vadd.f32 %v240_v27, %v205_v55  ;;  %v1074_v62 = vsel %vm228_vm10, %v1070_v26, %v1072_v8  ;;  %612 = vrot.lane.b32.xlu1 %v3128_v32, %s1816_s21  ;;  %v991_v39 = vmax.f32 %v989_v47, 0.0 }
 0x17f   :  { %v1078_v37 = vsel %vm2613_vm11, %v1074_v62, 0.0  ;;  %v1442_v6 = vmax.f32 %v1440_v19, 0.0 }
 0x180   :  { %v1080_v13 = vmul.f32 %v1078_v37, %v3146_v36  ;;  %v995_v60 = vcombine.low %v991_v39, %v991_v39 }
 0x181   :  { %v1084_v25 = vpop.permute.xlu0 %1083  ;;  %v223_v16 = vpop.permute.xlu1 %222  ;;  %v1446_v30 = vcombine.low %v1442_v6, %v1442_v6 }
 0x182   :  { %v1082_v32 = vadd.f32 %v1080_v13, %v2555_v35  ;;  %v229_v38 = vsel %vm228_vm10, %v223_v16, %v225_v28  ;;  %1240 = vrot.lane.b32.xlu1 %v2195_v61, %s1816_s21  ;;  %v1459_v28 = vld [vmem:[#allocation2 + $0x18] sm:$0xff]  ;;  %v62_v13 = vadd.s32 4294967294, %v2258_v59 }
 0x183   :  { %v233_v23 = vsel %vm2634_vm3, %v229_v38, 0.0  ;;  %v1461_v9 = vcombine.high %v1459_v28, %v1459_v28  ;;  %1463 = vst [vmem:[#allocation3 + $0x30] sm:$0xf] %v1459_v28  ;;  %v286_v38 = vrot.slane %v282_v4, %v2347_v44 }
 0x184   :  { %v239_v8 = vmul.f32 %v3146_v36, %v233_v23  ;;  %vm63_vm11 = vcmp.ge.s32.totalorder %v62_v13, 0  ;;  %vm64_vm13 = vcmp.lt.s32.totalorder %v62_v13, 16 }
 0x185   :  { %v301_v54 = vpop.permute.xlu0 %300  ;;  %v1068_v50 = vpop.permute.xlu1 %1067  ;;  %1464 = vst [vmem:[#allocation3 + $0x38] sm:$0xf] %v1461_v9  ;;  %vm65_vm15 = vmand %vm63_vm11, %vm64_vm13  ;;  %vm2708_vm2 = vcmp.eq.s32.totalorder %v286_v38, 1 }
 0x186   :  { %v241_v35 = vadd.f32 %v239_v8, %v2570_v40  ;;  %v1073_v12 = vsel %vm228_vm10, %v1068_v50, %v1070_v26  ;;  %1238 = vrot.lane.b32.xlu1 %v2518_v45, %s1816_s21  ;;  %v249_v40 = vrot.slane %v245_v0, %v2347_v44  ;;  %v1445_v26 = vcombine.low %v2575_v31, %v2575_v31 }
 0x187   :  { %v1077_v61 = vsel %vm2634_vm3, %v1073_v12, 0.0  ;;  %vm2693_vm10 = vcmp.eq.s32.totalorder %v290_v34, 1  ;;  %vm339_vm3 = vcmask 15360  }
 0x188   :  { %v1079_v22 = vmul.f32 %v1077_v61, %v3146_v36  ;;  %vm2668_vm9 = vcmp.eq.s32.totalorder %v249_v40, 1 }
 0x189   :  { %v1104_v17 = vpop.permute.xlu0 %1103  ;;  %v262_v2 = vpop.permute.xlu1 %261 }
 0x18a   :  { %v1081_v33 = vadd.f32 %v1079_v22, %v1065_v14  ;;  %v267_v21 = vsel %vm265_vm4, %v262_v2, %v264_v3  ;;  %1000 = vrot.lane.b32.xlu1 %v995_v60, %s1801_s29 }
 0x18b   :  { %v271_v10 = vsel %vm2657_vm5, %v267_v21, 0.0 }
 0x18c   :  { %v277_v57 = vmul.f32 %v2488_v43, %v271_v10 }
 0x18d   :  { %v2672_v63 = vpop.permute.xlu0 %402  ;;  %v1086_v41 = vpop.permute.xlu1 %1085 }
 0x18e   :  { %v279_v3 = vadd.f32 %v277_v57, %v242_v7  ;;  %v1089_v14 = vsel %vm265_vm4, %v1084_v25, %v1086_v41  ;;  %v1090_v20 = vsel %vm265_vm4, %v1086_v41, %v1088_v46  ;;  %1451 = vrot.lane.b32.xlu1 %v1446_v30, %s1801_s29 }
 0x18f   :  { %v1093_v55 = vsel %vm2668_vm9, %v1089_v14, 0.0  ;;  %v1094_v36 = vsel %vm2657_vm5, %v1090_v20, 0.0 }
 0x190   :  { %v1095_v27 = vmul.f32 %v1093_v55, %v2488_v43  ;;  %v1096_v24 = vmul.f32 %v1094_v36, %v2488_v43  ;;  %v66_v36 = vadd.s32 2, %v2258_v59 }
 0x191   :  { %v338_v46 = vpop.permute.xlu0 %337  ;;  %v260_v56 = vpop.permute.xlu1 %259 }
 0x192   :  { %v1097_v7 = vadd.f32 %v1095_v27, %v1081_v33  ;;  %v1098_v62 = vadd.f32 %v1096_v24, %v1082_v32  ;;  %v266_v37 = vsel %vm265_vm4, %v260_v56, %v262_v2  ;;  %1447 = vrot.lane.b32.xlu1 %v1445_v26, %s1801_s29  ;;  %v3159_v2 = vld [vmem:[#allocation4_spill] sm:$0xff]  ;;  %vm67_vm7 = vcmp.ge.s32.totalorder %v66_v36, 0 }
 0x193   :  { %v270_v47 = vsel %vm2668_vm9, %v266_v37, 0.0  ;;  %v364_v33 = vrot.slane %v2567_v18, %v3159_v2  ;;  %vm68_vm8 = vcmp.lt.s32.totalorder %v66_v36, 16 }
 0x194   :  { %v276_v53 = vmul.f32 %v2488_v43, %v270_v47  ;;  %vm69_vm6 = vmand %vm67_vm7, %vm68_vm8 }
 0x195   :  { %v1120_v0 = vpop.permute.xlu0 %1119  ;;  %v299_v25 = vpop.permute.xlu1 %298  ;;  %v366_v28 = vmul.f32 %v2020_v58, %v364_v33  ;;  %v1132_v24 = vmul.f32 %v2518_v45, %v364_v33 }
 0x196   :  { %v278_v16 = vadd.f32 %v276_v53, %v241_v35  ;;  %v304_v11 = vsel %vm302_vm14, %v299_v25, %v301_v54  ;;  %v319_v35 = vsel %vm65_vm15, 1, %v3113_v51 }
 0x197   :  { %v308_v48 = vsel %vm2693_vm10, %v304_v11, 0.0  ;;  %v327_v6 = vrot.slane %v319_v35, %v2328_v15  ;;  %v323_v9 = vrot.slane %v319_v35, %v2347_v44  ;;  %v368_v27 = vcombine.high %v366_v28, %v366_v28 }
 0x198   :  { %v314_v32 = vmul.f32 %v2587_v1, %v308_v48  ;;  %v1134_v47 = vcombine.high %v1132_v24, %v1132_v24 }
 0x199   :  { %v2702_v23 = vpop.permute.xlu0 %439  ;;  %v1102_v43 = vpop.permute.xlu1 %1101  ;;  %vm2731_vm4 = vcmp.eq.s32.totalorder %v327_v6, 1  ;;  %vm2751_vm5 = vcmp.eq.s32.totalorder %v323_v9, 1 }
 0x19a   :  { %v316_v42 = vadd.f32 %v314_v32, %v279_v3  ;;  %v1106_v52 = vsel %vm302_vm14, %v1102_v43, %v1104_v17  ;;  %v1474_v17 = vld [vmem:[%s3072_s4] sm:$0xf]  ;;  %v70_v32 = vadd.s32 4, %v2258_v59 }
 0x19b   :  { %v1110_v39 = vsel %vm2693_vm10, %v1106_v52, 0.0  ;;  %1477 = vperm.xlu0 %1772, %v1474_v17   ;;  %vm394_vm10 = vcmask 1031168  }
 0x19c   :  { %v1112_v19 = vmul.f32 %v1110_v39, %v2587_v1  ;;  %vm71_vm9 = vcmp.ge.s32.totalorder %v70_v32, 0 }
 0x19d   :  { %v2712_v54 = vpop.permute.xlu0 %390  ;;  %v297_v50 = vpop.permute.xlu1 %296 }
 0x19e   :  { %v1114_v12 = vadd.f32 %v1112_v19, %v1098_v62  ;;  %v303_v61 = vsel %vm302_vm14, %v297_v50, %v299_v25 }
 0x19f   :  { %v307_v29 = vsel %vm2708_vm2, %v303_v61, 0.0 }
 0x1a0   :  { %v313_v60 = vmul.f32 %v2587_v1, %v307_v29 }
 0x1a1   :  { %v2720_v22 = vpop.permute.xlu0 %1144  ;;  %v1100_v40 = vpop.permute.xlu1 %1099 }
 0x1a2   :  { %v315_v21 = vadd.f32 %v313_v60, %v278_v16  ;;  %v1105_v10 = vsel %vm302_vm14, %v1100_v40, %v1102_v43  ;;  %v374_v43 = vsel %vm69_vm6, 1, %v3113_v51  ;;  %vm72_vm14 = vcmp.lt.s32.totalorder %v70_v32, 16 }
 0x1a3   :  { %v1109_v30 = vsel %vm2708_vm2, %v1105_v10, 0.0  ;;  %v382_v50 = vrot.slane %v374_v43, %v2328_v15  ;;  %v378_v35 = vrot.slane %v374_v43, %v2347_v44  ;;  %vm73_vm11 = vmand %vm71_vm9, %vm72_vm14  ;;  %vm431_vm2 = vcmask 1014784  }
 0x1a4   :  { %v1111_v57 = vmul.f32 %v1109_v30, %v2587_v1  ;;  %v411_v2 = vsel %vm73_vm11, 1, %v3113_v51  ;;  %vm468_vm6 = vcmask 998400  }
 0x1a5   :  { %v2735_v41 = vpop.permute.xlu0 %513  ;;  %v336_v4 = vpop.permute.xlu1 %335  ;;  %vm384_vm13 = vcmp.eq.s32.totalorder %v382_v50, 1  ;;  %vm2777_vm15 = vcmp.eq.s32.totalorder %v378_v35, 1 }
 0x1a6   :  { %v1113_v18 = vadd.f32 %v1111_v57, %v1097_v7  ;;  %v341_v3 = vsel %vm339_vm3, %v336_v4, %v338_v46 }
 0x1a7   :  { %v345_v14 = vsel %vm2731_vm4, %v341_v3, 0.0  ;;  %v74_v3 = vadd.s32 6, %v2258_v59 }
 0x1a8   :  { %v351_v20 = vmul.f32 %v2604_v49, %v345_v14 }
 0x1a9   :  { %v2743_v1 = vpop.permute.xlu0 %1740  ;;  %v1118_v55 = vpop.permute.xlu1 %1117 }
 0x1aa   :  { %v353_v26 = vadd.f32 %v351_v20, %v316_v42  ;;  %v1122_v58 = vsel %vm339_vm3, %v1118_v55, %v1120_v0  ;;  %v419_v20 = vrot.slane %v411_v2, %v2328_v15 }
 0x1ab   :  { %v1126_v34 = vsel %vm2731_vm4, %v1122_v58, 0.0  ;;  %vm76_vm4 = vcmp.lt.s32.totalorder %v74_v3, 16 }
 0x1ac   :  { %v371_v46 = vadd.f32 %v368_v27, %v353_v26  ;;  %v1128_v56 = vmul.f32 %v1126_v34, %v2604_v49  ;;  %v1742_v27 = vunpack.i.l.bf16 %v2743_v1  ;;  %vm2810_vm7 = vcmp.eq.s32.totalorder %v419_v20, 1 }
 0x1ad   :  { %v2755_v62 = vpop.permute.xlu0 %425  ;;  %v334_v37 = vpop.permute.xlu1 %333 }
 0x1ae   :  { %v1130_v45 = vadd.f32 %v1128_v56, %v1114_v12  ;;  %v340_v13 = vsel %vm339_vm3, %v334_v37, %v336_v4 }
 0x1af   :  { %v344_v53 = vsel %vm2751_vm5, %v340_v13, 0.0 }
 0x1b0   :  { %v1137_v31 = vadd.f32 %v1134_v47, %v1130_v45  ;;  %v350_v0 = vmul.f32 %v2604_v49, %v344_v53 }
 0x1b1   :  { %v2761_v25 = vpop.permute.xlu0 %1158  ;;  %v1116_v16 = vpop.permute.xlu1 %1115 }
 0x1b2   :  { %v352_v11 = vadd.f32 %v350_v0, %v315_v21  ;;  %v1121_v48 = vsel %vm339_vm3, %v1116_v16, %v1118_v55  ;;  %vm75_vm3 = vcmp.ge.s32.totalorder %v74_v3, 0 }
 0x1b3   :  { %v1125_v38 = vsel %vm2751_vm5, %v1121_v48, 0.0  ;;  %vm77_vm8 = vmand %vm75_vm3, %vm76_vm4 }
 0x1b4   :  { %v1127_v42 = vmul.f32 %v1125_v38, %v2604_v49  ;;  %v370_v52 = vadd.f32 %v366_v28, %v352_v11  ;;  %v448_v16 = vsel %vm77_vm8, 1, %v3113_v51 }
 0x1b5   :  { %v2769_v39 = vpop.permute.xlu0 %1746  ;;  %v2771_v19 = vpop.permute.xlu1 %476  ;;  %v456_v35 = vrot.slane %v448_v16, %v2328_v15 }
 0x1b6   :  { %v1129_v8 = vadd.f32 %v1127_v42, %v1113_v18  ;;  %v415_v18 = vrot.slane %v411_v2, %v2347_v44  ;;  %v2839_v42 = vld [vmem:[%s3071_s5] sm:$0x3] }
 0x1b7   :  { %vm2855_vm11 = vcmp.eq.s32.totalorder %v456_v35, 1 }
 0x1b8   :  { %v1136_v12 = vadd.f32 %v1132_v24, %v1129_v8  ;;  %vm2806_vm5 = vcmp.eq.s32.totalorder %v415_v18, 1 }
 0x1b9   :  { %v2775_v61 = vpop.permute.xlu0 %462  ;;  %v1735_v29 = vpop.permute.xlu1 %1734 }
 0x1ba   :  { %v1737_v60 = vunpack.i.h.bf16 %v1735_v29  ;;  %v1736_v49 = vunpack.i.l.bf16 %v1735_v29 }
 0x1bc   :  { %v396_v40 = vsel %vm394_vm10, %v2712_v54, %v1736_v49  ;;  %v1149_v17 = vsel %vm394_vm10, %v2720_v22, %v1737_v60  ;;  %v1748_v60 = vunpack.i.l.bf16 %v2769_v39 }
 0x1bd   :  { %v2786_v33 = vpop.permute.xlu0 %1174  ;;  %v389_v21 = vpop.permute.xlu1 %388  ;;  %v400_v10 = vsel %vm384_vm13, %v396_v40, 0.0  ;;  %v1153_v30 = vsel %vm384_vm13, %v1149_v17, 0.0 }
 0x1be   :  { %v395_v57 = vsel %vm394_vm10, %v389_v21, %v2712_v54  ;;  %v406_v5 = vmul.f32 %v2672_v63, %v400_v10  ;;  %v1155_v4 = vmul.f32 %v1153_v30, %v2672_v63  ;;  %v1749_v21 = vunpack.i.h.bf16 %v2769_v39 }
 0x1bf   :  { %v399_v28 = vsel %vm2777_vm15, %v395_v57, 0.0 }
 0x1c0   :  { %v405_v14 = vmul.f32 %v2672_v63, %v399_v28  ;;  %v408_v9 = vadd.f32 %v406_v5, %v371_v46  ;;  %v1157_v55 = vadd.f32 %v1155_v4, %v1137_v31 }
 0x1c1   :  { %v2798_v36 = vpop.permute.xlu0 %1752  ;;  %v1143_v54 = vpop.permute.xlu1 %1142 }
 0x1c2   :  { %v407_v24 = vadd.f32 %v405_v14, %v370_v52  ;;  %v1148_v26 = vsel %vm394_vm10, %v1143_v54, %v2720_v22  ;;  %v1743_v22 = vunpack.i.h.bf16 %v2743_v1  ;;  %v78_v52 = vadd.s32 8, %v2839_v42 }
 0x1c3   :  { %v1152_v58 = vsel %vm2777_vm15, %v1148_v26, 0.0  ;;  %vm505_vm15 = vcmask 982016  }
 0x1c4   :  { %v1154_v59 = vmul.f32 %v1152_v58, %v2672_v63  ;;  %vm79_vm9 = vcmp.ge.s32.totalorder %v78_v52, 0  ;;  %vm80_vm14 = vcmp.lt.s32.totalorder %v78_v52, 16 }
 0x1c5   :  { %v2814_v56 = vpop.permute.xlu0 %499  ;;  %v428_v7 = vpop.permute.xlu1 %427  ;;  %vm81_vm13 = vmand %vm79_vm9, %vm80_vm14 }
 0x1c6   :  { %v1156_v37 = vadd.f32 %v1154_v59, %v1136_v12  ;;  %v432_v47 = vsel %vm431_vm2, %v2755_v62, %v428_v7  ;;  %v433_v45 = vsel %vm431_vm2, %v428_v7, %v1742_v27  ;;  %v485_v39 = vsel %vm81_vm13, 1, %v3113_v51 }
 0x1c7   :  { %v436_v63 = vsel %vm2806_vm5, %v432_v47, 0.0  ;;  %v437_v13 = vsel %vm2810_vm7, %v433_v45, 0.0  ;;  %v489_v26 = vrot.slane %v485_v39, %v2347_v44  ;;  %v493_v58 = vrot.slane %v485_v39, %v2328_v15 }
 0x1c8   :  { %v442_v53 = vmul.f32 %v2702_v23, %v436_v63  ;;  %v443_v31 = vmul.f32 %v2702_v23, %v437_v13  ;;  %v1755_v13 = vunpack.i.h.bf16 %v2798_v36 }
 0x1c9   :  { %v2826_v0 = vpop.permute.xlu0 %1190  ;;  %v1161_v1 = vpop.permute.xlu1 %1160  ;;  %vm2894_vm3 = vcmp.eq.s32.totalorder %v493_v58, 1 }
 0x1ca   :  { %v444_v11 = vadd.f32 %v442_v53, %v407_v24  ;;  %v445_v62 = vadd.f32 %v443_v31, %v408_v9  ;;  %v1164_v48 = vsel %vm431_vm2, %v2761_v25, %v1161_v1  ;;  %v1165_v32 = vsel %vm431_vm2, %v1161_v1, %v1743_v22 }
 0x1cb   :  { %v1168_v38 = vsel %vm2806_vm5, %v1164_v48, 0.0  ;;  %v1169_v43 = vsel %vm2810_vm7, %v1165_v32, 0.0  ;;  %v452_v25 = vrot.slane %v448_v16, %v2347_v44  ;;  %vm2890_vm2 = vcmp.eq.s32.totalorder %v489_v26, 1 }
 0x1cc   :  { %v1170_v8 = vmul.f32 %v1168_v38, %v2702_v23  ;;  %v1171_v50 = vmul.f32 %v1169_v43, %v2702_v23  ;;  %v82_v32 = vadd.s32 10, %v2839_v42 }
 0x1cd   :  { %v2846_v12 = vpop.permute.xlu0 %1758  ;;  %v2848_v29 = vpop.permute.xlu1 %550  ;;  %vm2851_vm10 = vcmp.eq.s32.totalorder %v452_v25, 1 }
 0x1ce   :  { %v1172_v49 = vadd.f32 %v1170_v8, %v1156_v37  ;;  %v1173_v6 = vadd.f32 %v1171_v50, %v1157_v55  ;;  %vm83_vm4 = vcmp.ge.s32.totalorder %v82_v32, 0  ;;  %vm84_vm5 = vcmp.lt.s32.totalorder %v82_v32, 16 }
 0x1cf   :  { %vm85_vm7 = vmand %vm83_vm4, %vm84_vm5  ;;  %vm579_vm4 = vcmask 949248  }
 0x1d0   :  { %v522_v23 = vsel %vm85_vm7, 1, %v3113_v51  ;;  %vm616_vm7 = vcmask 932864  }
 0x1d1   :  { %v2859_v17 = vpop.permute.xlu0 %536  ;;  %v465_v2 = vpop.permute.xlu1 %464 }
 0x1d2   :  { %v469_v10 = vsel %vm468_vm6, %v2775_v61, %v465_v2  ;;  %v470_v30 = vsel %vm468_vm6, %v465_v2, %v1748_v60  ;;  %v86_v60 = vadd.s32 12, %v2839_v42 }
 0x1d3   :  { %v473_v57 = vsel %vm2851_vm10, %v469_v10, 0.0  ;;  %v474_v5 = vsel %vm2855_vm11, %v470_v30, 0.0  ;;  %v526_v10 = vrot.slane %v522_v23, %v2347_v44  ;;  %v1760_v30 = vunpack.i.l.bf16 %v2846_v12 }
 0x1d4   :  { %v479_v4 = vmul.f32 %v2771_v19, %v473_v57  ;;  %v480_v28 = vmul.f32 %v2771_v19, %v474_v5  ;;  %vm87_vm8 = vcmp.ge.s32.totalorder %v86_v60, 0  ;;  %v530_v5 = vrot.slane %v522_v23, %v2328_v15 }
 0x1d5   :  { %v2871_v18 = vpop.permute.xlu0 %575  ;;  %v1177_v3 = vpop.permute.xlu1 %1176 }
 0x1d6   :  { %v481_v14 = vadd.f32 %v479_v4, %v444_v11  ;;  %v482_v61 = vadd.f32 %v480_v28, %v445_v62  ;;  %v1180_v20 = vsel %vm468_vm6, %v2786_v33, %v1177_v3  ;;  %v1181_v9 = vsel %vm468_vm6, %v1177_v3, %v1749_v21 }
 0x1d7   :  { %v1184_v55 = vsel %vm2851_vm10, %v1180_v20, 0.0  ;;  %v1185_v54 = vsel %vm2855_vm11, %v1181_v9, 0.0  ;;  %v1754_v33 = vunpack.i.l.bf16 %v2798_v36  ;;  %vm88_vm6 = vcmp.lt.s32.totalorder %v86_v60, 16 }
 0x1d8   :  { %v1186_v27 = vmul.f32 %v1184_v55, %v2771_v19  ;;  %v1187_v24 = vmul.f32 %v1185_v54, %v2771_v19  ;;  %vm89_vm9 = vmand %vm87_vm8, %vm88_vm6  ;;  %vm542_vm11 = vcmask 965632   ;;  %v1761_v20 = vunpack.i.h.bf16 %v2846_v12 }
 0x1d9   :  { %v2885_v59 = vpop.permute.xlu0 %1224  ;;  %v2887_v34 = vpop.permute.xlu1 %587  ;;  %v559_v57 = vsel %vm89_vm9, 1, %v3113_v51  ;;  %vm1817_vm9 = vmmov 1  }
 0x1da   :  { %v1188_v46 = vadd.f32 %v1186_v27, %v1172_v49  ;;  %v1189_v7 = vadd.f32 %v1187_v24, %v1173_v6  ;;  %v563_v39 = vrot.slane %v559_v57, %v2347_v44 }
 0x1dc   :  { %vm2972_vm5 = vcmp.eq.s32.totalorder %v563_v39, 1 }
 0x1dd   :  { %v2898_v19 = vpop.permute.xlu0 %1222  ;;  %v502_v47 = vpop.permute.xlu1 %501 }
 0x1de   :  { %v506_v45 = vsel %vm505_vm15, %v2814_v56, %v502_v47  ;;  %v507_v63 = vsel %vm505_vm15, %v502_v47, %v1754_v33 }
 0x1df   :  { %v510_v53 = vsel %vm2890_vm2, %v506_v45, 0.0  ;;  %v511_v31 = vsel %vm2894_vm3, %v507_v63, 0.0 }
 0x1e0   :  { %v516_v1 = vmul.f32 %v2735_v41, %v510_v53  ;;  %v517_v16 = vmul.f32 %v2735_v41, %v511_v31 }
 0x1e1   :  { %v2910_v11 = vpop.permute.xlu0 %1768  ;;  %v1193_v62 = vpop.permute.xlu1 %1192 }
 0x1e2   :  { %v2912_v48 = vadd.f32 %v516_v1, %v481_v14  ;;  %v2914_v56 = vadd.f32 %v517_v16, %v482_v61  ;;  %v1196_v36 = vsel %vm505_vm15, %v2826_v0, %v1193_v62  ;;  %v1197_v38 = vsel %vm505_vm15, %v1193_v62, %v1755_v13 }
 0x1e3   :  { %v1200_v43 = vsel %vm2890_vm2, %v1196_v36, 0.0  ;;  %v1201_v52 = vsel %vm2894_vm3, %v1197_v38, 0.0  ;;  %vm2949_vm15 = vcmp.eq.s32.totalorder %v526_v10, 1  ;;  %vm2956_vm2 = vcmp.eq.s32.totalorder %v530_v5, 1 }
 0x1e4   :  { %v1202_v8 = vmul.f32 %v1200_v43, %v2735_v41  ;;  %v1203_v50 = vmul.f32 %v1201_v52, %v2735_v41  ;;  %v90_v41 = vadd.s32 14, %v2839_v42  ;;  %v567_v42 = vrot.slane %v559_v57, %v2328_v15 }
 0x1e5   :  { %v2926_v25 = vpop.permute.xlu0 %610  ;;  %v2928_v35 = vpop.permute.xlu1 %624  ;;  %v1770_v63 = vunpack.i.l.bf16 %v2910_v11  ;;  %v1228_v43 = vsel %vm579_vm4, %v2898_v19, %v2885_v59  ;;  %v1771_v52 = vunpack.i.h.bf16 %v2910_v11 }
 0x1e6   :  { %v2931_v0 = vadd.f32 %v1202_v8, %v1188_v46  ;;  %v2933_v49 = vadd.f32 %v1203_v50, %v1189_v7  ;;  %vm91_vm14 = vcmp.ge.s32.totalorder %v90_v41, 0  ;;  %vm92_vm10 = vcmp.lt.s32.totalorder %v90_v41, 16 }
 0x1e7   :  { %vm93_vm13 = vmand %vm91_vm14, %vm92_vm10  ;;  %vm2962_vm3 = vcmp.eq.s32.totalorder %v567_v42, 1 }
 0x1e8   :  { %v596_v54 = vsel %vm93_vm13, 1, %v3113_v51  ;;  %v1471_v51 = vld [vmem:[#allocation3 + $0x28] sm:$0xf]  ;;  %vm3045_vm14 = vmpackc.low %vm674_vm0, %vm1817_vm9 }
 0x1e9   :  { %v2935_v6 = vpop.permute.xlu0 %998  ;;  %v539_v40 = vpop.permute.xlu1 %538  ;;  %v600_v33 = vrot.slane %v596_v54, %v2347_v44  ;;  %v604_v46 = vrot.slane %v596_v54, %v2328_v15 }
 0x1ea   :  { %v543_v61 = vsel %vm542_vm11, %v2859_v17, %v539_v40  ;;  %v544_v55 = vsel %vm542_vm11, %v539_v40, %v1760_v30 }
 0x1eb   :  { %v547_v26 = vsel %vm2949_vm15, %v543_v61, 0.0  ;;  %v548_v12 = vsel %vm2956_vm2, %v544_v55, 0.0  ;;  %vm2993_vm8 = vcmp.eq.s32.totalorder %v600_v33, 1  ;;  %vm2997_vm6 = vcmp.eq.s32.totalorder %v604_v46, 1 }
 0x1ec   :  { %v553_v37 = vmul.f32 %v2848_v29, %v547_v26  ;;  %v554_v13 = vmul.f32 %v2848_v29, %v548_v12 }
 0x1ed   :  { %v2939_v2 = vpop.permute.xlu0 %1449  ;;  %v1209_v21 = vpop.permute.xlu1 %1208 }
 0x1ee   :  { %v1213_v7 = vsel %vm542_vm11, %v1209_v21, %v1761_v20  ;;  %v555_v8 = vadd.f32 %v553_v37, %v2912_v48  ;;  %v556_v60 = vadd.f32 %v554_v13, %v2914_v56  ;;  %v1470_v37 = vld [vmem:[#allocation3 + $0x20] sm:$0xf] }
 0x1ef   :  { %v1217_v31 = vsel %vm2956_vm2, %v1213_v7, 0.0 }
 0x1f0   :  { %v1219_v40 = vmul.f32 %v1217_v31, %v2848_v29 }
 0x1f1   :  { %v997_v4 = vpop.permute.xlu0 %996  ;;  %v1207_v28 = vpop.permute.xlu1 %1206 }
 0x1f2   :  { %v1002_v3 = vsel %vm676_vm1, %v997_v4, %v2935_v6  ;;  %v1212_v47 = vsel %vm542_vm11, %v1207_v28, %v1209_v21  ;;  %v1232_v28 = vsel %vm2972_vm5, %v1228_v43, 0.0 }
 0x1f3   :  { %1006 = vst [vmem:[#allocation3] sm:$0xf0] %v1002_v3  ;;  %v1216_v32 = vsel %vm2949_vm15, %v1212_v47, 0.0 }
 0x1f4   :  { %v1218_v21 = vmul.f32 %v1216_v32, %v2848_v29 }
 0x1f5   :  { %v1764_v27 = vpop.permute.xlu1 %1763 }
 0x1f6   :  { %v1766_v17 = vunpack.i.h.bf16 %v1764_v27  ;;  %v1765_v58 = vunpack.i.l.bf16 %v1764_v27  ;;  %v1220_v42 = vadd.f32 %v1218_v21, %v2931_v0 }
 0x1f8   :  { %v581_v22 = vsel %vm579_vm4, %v2871_v18, %v1765_v58  ;;  %v1229_v45 = vsel %vm579_vm4, %v2885_v59, %v1766_v17 }
 0x1f9   :  { %v585_v44 = vsel %vm2962_vm3, %v581_v22, 0.0  ;;  %v574_v15 = vpop.permute.xlu1 %573 }
 0x1fa   :  { %v580_v53 = vsel %vm579_vm4, %v574_v15, %v2871_v18  ;;  %v1233_v18 = vsel %vm2962_vm3, %v1229_v45, 0.0  ;;  %v591_v36 = vmul.f32 %v2887_v34, %v585_v44  ;;  %v1473_v15 = vld [vmem:[#allocation3 + $0x38] sm:$0xf] }
 0x1fb   :  { %v584_v1 = vsel %vm2972_vm5, %v580_v53, 0.0  ;;  %v1235_v10 = vmul.f32 %v1233_v18, %v2887_v34  ;;  %v1472_v53 = vld [vmem:[#allocation3 + $0x30] sm:$0xf] }
 0x1fc   :  { %v590_v38 = vmul.f32 %v2887_v34, %v584_v1  ;;  %v593_v48 = vadd.f32 %v591_v36, %v556_v60 }
 0x1fd   :  { %v613_v50 = vpop.permute.xlu1 %612 }
 0x1fe   :  { %v617_v41 = vsel %vm616_vm7, %v2926_v25, %v613_v50  ;;  %v618_v23 = vsel %vm616_vm7, %v613_v50, %v1770_v63  ;;  %v592_v11 = vadd.f32 %v590_v38, %v555_v8  ;;  %v1221_v25 = vadd.f32 %v1219_v40, %v2933_v49 }
 0x1ff   :  { %v621_v59 = vsel %vm2993_vm8, %v617_v41, 0.0  ;;  %v622_v19 = vsel %vm2997_vm6, %v618_v23, 0.0  ;;  %v1234_v49 = vmul.f32 %v1232_v28, %v2887_v34 }
 0x200   :  { %v627_v56 = vmul.f32 %v2928_v35, %v621_v59  ;;  %v628_v30 = vmul.f32 %v2928_v35, %v622_v19  ;;  %v1237_v61 = vadd.f32 %v1235_v10, %v1221_v25 }
 0x201   :  { %v1241_v57 = vpop.permute.xlu1 %1240  ;;  %v1236_v24 = vadd.f32 %v1234_v49, %v1220_v42 }
 0x202   :  { %v629_v5 = vadd.f32 %v627_v56, %v592_v11  ;;  %v630_v4 = vadd.f32 %v628_v30, %v593_v48  ;;  %v1245_v29 = vsel %vm616_vm7, %v1241_v57, %v1771_v52 }
 0x203   :  { %v1249_v3 = vsel %vm2997_vm6, %v1245_v29, 0.0 }
 0x204   :  { %v631_v39 = vmax.f32 %v629_v5, 0.0  ;;  %v632_v14 = vmax.f32 %v630_v4, 0.0  ;;  %v1251_v20 = vmul.f32 %v1249_v3, %v2928_v35 }
 0x205   :  { %v1239_v9 = vpop.permute.xlu1 %1238 }
 0x206   :  { %633 = vst [vmem:[#allocation3] sm:$0xf] %v631_v39  ;;  %634 = vst [vmem:[#allocation3 + $0x8] sm:$0xf] %v632_v14  ;;  %v1253_v55 = vadd.f32 %v1251_v20, %v1237_v61  ;;  %v1244_v54 = vsel %vm616_vm7, %v1239_v9, %v1241_v57 }
 0x207   :  { %v1248_v27 = vsel %vm2993_vm8, %v1244_v54, 0.0 }
 0x208   :  { %v1255_v0 = vmax.f32 %v1253_v55, 0.0  ;;  %v1250_v26 = vmul.f32 %v1248_v27, %v2928_v35 }
 0x209   :  { %v1001_v17 = vpop.permute.xlu1 %1000 }
 0x20a   :  { %1257 = vst [vmem:[#allocation3 + $0x18] sm:$0xf] %v1255_v0  ;;  %v1252_v58 = vadd.f32 %v1250_v26, %v1236_v24  ;;  %v1003_v12 = vsel %vm676_vm1, %v2935_v6, %v1001_v17 }
 0x20b   :  { %1007 = vst [vmem:[#allocation3 + $0x8] sm:$0xf0] %v1003_v12 }
 0x20c   :  { %v1254_v34 = vmax.f32 %v1252_v58, 0.0 }
 0x20d   :  { %v1452_v33 = vpop.permute.xlu1 %1451  ;;  %v1466_v22 = vld [vmem:[#allocation3] sm:$0xff] }
 0x20e   :  { %1256 = vst [vmem:[#allocation3 + $0x10] sm:$0xf] %v1254_v34  ;;  %v1454_v46 = vsel %vm676_vm1, %v2939_v2, %v1452_v33  ;;  %v1663_v44 = vpack.c.bf16 %v1470_v37, %v1466_v22 }
 0x20f   :  { %1458 = vst [vmem:[#allocation3 + $0x18] sm:$0xf0] %v1454_v46 }
 0x211   :  { %v1448_v7 = vpop.permute.xlu1 %1447 }
 0x212   :  { %v1453_v35 = vsel %vm676_vm1, %v1448_v7, %v2939_v2  ;;  %v1467_v47 = vld [vmem:[#allocation3 + $0x8] sm:$0xff]  ;;  %v1465_v2 = vld [vmem:[%s3073_s3] sm:$0xf] }
 0x213   :  { %1457 = vst [vmem:[#allocation3 + $0x10] sm:$0xf0] %v1453_v35  ;;  %v1660_v45 = vpack.c.bf16 %v1471_v51, %v1467_v47 }
 0x215   :  { %1662 = vmatprep.subr.msk.bf16.mxu0 %vm3045_vm14, %v1660_v45 }
 0x216   :  { %1665 = vmatpush1.bf16.msk.msra.mxu0 %vm3045_vm14, %v1663_v44  ;;  %v1469_v63 = vld [vmem:[#allocation3 + $0x18] sm:$0xff] }
 0x217   :  { %v1666_v13 = vpack.c.bf16 %v1473_v15, %v1469_v63 }
 0x219   :  { %1668 = vmatprep.subr.msk.bf16.mxu1 %vm3045_vm14, %v1666_v13  ;;  %1655 = vmatmul.mubr.msk.f32.vlgmr.msra.gmra.mrb[0].mxu0 %vm154_vm12, %v1465_v2 }
 0x21a   :  { %v1468_v31 = vld [vmem:[#allocation3 + $0x10] sm:$0xff]  ;;  %v1478_v16 = vpop.permute.xlu0 %1477 }
 0x21b   :  { %v1669_v1 = vpack.c.bf16 %v1472_v53, %v1468_v31 }
 0x21d   :  { %1671 = vmatpush1.bf16.msk.msra.mxu1 %vm3045_vm14, %v1669_v1 }
 0x220   :  { %1658 = vmatmul.mubr.msk.f32.vlgmr.msra.gmra.mrb[0].mxu1 %vm154_vm12, %v1465_v2 }
 0x2ec   :  { %v1561_v62 = vpop.f32.mrb[0].mxu0 }
 0x2ed   :  { %v1562_v32 = vadd.f32 %v1561_v62, %v1478_v16  ;;  %v1563_v18 = vpop.f32.mrb[1].mxu0 }
 0x2ee   :  { %v1564_v36 = vadd.f32 %v1563_v18, %v1478_v16 }
 0x2f0   :  { %v1639_v38 = vcombine.low %v1562_v32, %v1564_v36 }
 0x2f2   :  { %1641 = vst [vmem:[%s3074_s6] sm:$0xff] %v1639_v38 }
 0x2f3   :  { %v1632_v43 = vpop.f32.mrb[0].mxu1 }
 0x2f4   :  { %v1633_v52 = vadd.f32 %v1632_v43, %v1478_v16  ;;  %v1634_v8 = vpop.f32.mrb[1].mxu1 }
 0x2f5   :  { %v1635_v50 = vadd.f32 %v1634_v8, %v1478_v16 }
 0x2f7   :  { %v1644_v60 = vcombine.low %v1633_v52, %v1635_v50 }
 0x2f9   :  { %1659 = vst [vmem:[%s3074_s6 + $0x8] sm:$0xff] %v1644_v60 }

</bundles_post_ra>
